<compile_context>
chip_gen: v7x
topology: tpu7x:2x2x1
jax: 0.10.0
libtpu: 0.0.40
codegen_flags: <defaults>
</compile_context>

<pallas_src>
import numpy as np
import jax
import jax.numpy as jnp
from jax.experimental import pallas as pl
from jax.experimental.pallas import tpu as pltpu

_LANE = 128


# ----------------------------- fixed filters ------------------------------ #
def _img_gaussian(sigma):
    size = 2 * sigma + 1
    g = np.zeros((size, size), dtype=np.float64)
    for x in range(-sigma, sigma + 1):
        for y in range(-sigma, sigma + 1):
            g[x + sigma, y + sigma] = np.exp(-0.5 * (x * x + y * y) / sigma ** 2)
    return g / g.sum()


_FILT = {
    "GM": _img_gaussian(1).astype(np.float32),
    "LE": np.array([[0, 1, 0], [1, -4, 1], [0, 1, 0]], dtype=np.float32),
    "LD": np.array([[1, 1, 1], [1, -8, 1], [1, 1, 1]], dtype=np.float32),
    "SV": np.array([[-1, 0, 1], [-2, 0, 2], [-1, 0, 1]], dtype=np.float32),
    "SH": np.array([[-1, -2, -1], [0, 0, 0], [1, 2, 1]], dtype=np.float32),
}


# -------------------- polyphase decomposition of the tconv ------------------ #
# ConvTranspose2d(k=3, s=2, p=1, op=1):
#   y[2m+a, 2n+b] = sum_{(dh,kh) in R[a]} sum_{(dw,kw) in R[b]} w[kh,kw]*x[m+dh, n+dw]
# with x[H,*] = x[*,W] = 0 (handled by a one-element zero halo).
_R = {0: ((0, 1),), 1: ((0, 2), (1, 0))}


def _phase_terms(w):
    """For each output phase (a,b): list of (dh, dw, weight); zero taps skipped."""
    w = np.asarray(w, np.float64)
    terms = {}
    for a in (0, 1):
        for b in (0, 1):
            lst = []
            for dh, kh in _R[a]:
                for dw, kw in _R[b]:
                    wv = float(w[kh, kw])
                    if wv != 0.0:
                        lst.append((dh, dw, wv))
            terms[(a, b)] = lst
    return terms


def _emit_weighted_sum(terms, fetch, acc=None):
    """Emit acc (+)= sum_i w_i * fetch(dh_i, dw_i).

    Taps sharing the same |weight| are summed first and multiplied once
    (v5e/v6e have no f32 FMA, so this directly removes VPU multiplies);
    |weight| == 1 taps are pure adds/subs.  Returns None iff terms empty and
    acc was None.
    """
    groups = []          # [ [abs_w, pos_taps, neg_taps], ... ] in first-seen order
    index = {}
    for dh, dw, wv in terms:
        key = float(abs(wv))
        if key not in index:
            index[key] = len(groups)
            groups.append([key, [], []])
        groups[index[key]][1 if wv > 0 else 2].append((dh, dw))

    for aw, pos, neg in groups:
        psum = None
        for dh, dw in pos:
            v = fetch(dh, dw)
            psum = v if psum is None else psum + v
        nsum = None
        for dh, dw in neg:
            v = fetch(dh, dw)
            nsum = v if nsum is None else nsum + v
        if aw == 1.0:
            if psum is not None:
                acc = psum if acc is None else acc + psum
            if nsum is not None:
                acc = -nsum if acc is None else acc - nsum
        else:
            if psum is not None and nsum is not None:
                val = aw * (psum - nsum)
            elif psum is not None:
                val = aw * psum
            else:
                val = (-aw) * nsum
            acc = val if acc is None else acc + val
    return acc


# ------------------------------- fused kernel ------------------------------ #
def _make_fused_kernel(det_filts, gm_filt, H, W, separate):
    """Two-stage fused transposed-conv kernel.

    Stage 1 builds the (2H, 2W) 'mid' tensor(s) as four (H, W) phases held in a
    VMEM scratch (with a one-element zero halo).  Stage 2 applies the Gaussian
    transposed conv to the mid phases with a second polyphase level, producing
    16 dense (H, W, 128) output phase slabs per branch.

    separate=False: one mid = GM + sum_t T_{w_t}(detail_t)   ('sum' branch)
    separate=True : 5 mids  = [GM, T_le(LE), T_ld(LD), T_sv(SV), T_sh(SH)] ('cat6')
    """
    det_terms = [_phase_terms(f) for f in det_filts]
    g_terms = _phase_terms(gm_filt)
    n_det = len(det_filts)
    n_branch = (1 + n_det) if separate else 1

    def kernel(*refs):
        gm_ref = refs[0]
        det_refs = refs[1:1 + n_det]
        o_ref = refs[1 + n_det]
        mid_ref = refs[2 + n_det]
        lanes = mid_ref.shape[-1]

        # ---- init: only the zero halo (row H / col W) needs zeroing; the bulk
        # of every phase is fully (re)written by stage 1 each grid step, so each
        # step is self-contained (safe under megacore "parallel" sharding).
        zrow = jnp.zeros((1, W + 1, lanes), jnp.float32)
        zcol = jnp.zeros((H, 1, lanes), jnp.float32)
        for ph in range(n_branch * 4):
            mid_ref[ph, H:H + 1, :, :] = zrow
            mid_ref[ph, 0:H, W:W + 1, :] = zcol

        zbulk = None  # lazily created zeros for structurally-empty detail phases

        # ---------------- stage 1: mid phases ---------------- #
        for a in (0, 1):
            for b in (0, 1):
                ph = 2 * a + b
                if separate:
                    mid_ref[ph, 0:H, 0:W, :] = gm_ref[ph]
                    for t, (t_ref, terms) in enumerate(zip(det_refs, det_terms)):
                        acc = _emit_weighted_sum(
                            terms[(a, b)],
                            lambda dh, dw, r=t_ref: r[dh:dh + H, dw:dw + W, :])
                        if acc is None:          # phase with no non-zero taps
                            if zbulk is None:
                                zbulk = jnp.zeros((H, W, lanes), jnp.float32)
                            acc = zbulk
                        mid_ref[(t + 1) * 4 + ph, 0:H, 0:W, :] = acc
                else:
                    acc = gm_ref[ph]
                    for t_ref, terms in zip(det_refs, det_terms):
                        acc = _emit_weighted_sum(
                            terms[(a, b)],
                            lambda dh, dw, r=t_ref: r[dh:dh + H, dw:dw + W, :],
                            acc)
                    mid_ref[ph, 0:H, 0:W, :] = acc

        # -------- stage 2: Gaussian tconv of every mid branch -------- #
        for br in range(n_branch):
            for a in (0, 1):
                for b in (0, 1):
                    def fetch(du, dv, br=br, a=a, b=b):
                        ap, dm = (a + du) % 2, (a + du) // 2
                        bp, dn = (b + dv) % 2, (b + dv) // 2
                        return mid_ref[br * 4 + 2 * ap + bp,
                                       dm:dm + H, dn:dn + W, :]
                    for c in (0, 1):
                        for d in (0, 1):
                            acc = _emit_weighted_sum(g_terms[(c, d)], fetch)
                            out_idx = br * 16 + (((a * 2 + c) * 2 + b) * 2 + d)
                            o_ref[out_idx, :, :, :] = acc

    return kernel


# ----------------------------- layout plumbing ----------------------------- #
def _planes_last(x, ptot):
    """(B, C, H, W) -> (H, W, Ptot) with plane (=B*C) padding to the lane width."""
    B, C, H, W = x.shape
    x = jnp.transpose(x.reshape(B * C, H, W), (1, 2, 0))
    return jnp.pad(x, ((0, 0), (0, 0), (0, ptot - B * C)))


def _detail_planes(x, ptot):
    """Detail tensor with a one-element zero halo: (H+1, W+1, Ptot)."""
    return jnp.pad(_planes_last(x, ptot), ((0, 1), (0, 1), (0, 0)))


def _gm_phases(gm, ptot):
    """GM (B, C, 2H, 2W) -> phase-split (4, H, W, Ptot), index = 2*a + b."""
    B, C, H2, W2 = gm.shape
    H, W = H2 // 2, W2 // 2
    g = _planes_last(gm, ptot)                                  # (2H, 2W, P)
    g = g.reshape(H, 2, W, 2, ptot).transpose(1, 3, 0, 2, 4)    # (a, b, m, n, p)
    return g.reshape(4, H, W, ptot)


def _assemble(o, B, C, H, W):
    """(nb*16, H, W, Ptot) phase-major kernel output -> (nb, B, C, 4H, 4W)."""
    nb = o.shape[0] // 16
    ptot = o.shape[-1]
    o = o.reshape(nb, 2, 2, 2, 2, H, W, ptot)      # (br, a, c, b, d, m, n, p)
    o = o.transpose(0, 7, 5, 1, 2, 6, 3, 4)        # (br, p, m, a, c, n, b, d)
    o = o.reshape(nb, ptot, 4 * H, 4 * W)[:, :B * C]
    return o.reshape(nb, B, C, 4 * H, 4 * W)


# ------------------------------ fused wrapper ------------------------------ #
def _fused_call(GM, LE, LD, SV, SH, separate):
    B, C, H, W = LE.shape
    assert LD.shape == LE.shape and SV.shape == LE.shape and SH.shape == LE.shape
    assert GM.shape == (B, C, 2 * H, 2 * W), (GM.shape, LE.shape)
    BC = B * C
    ptot = ((BC + _LANE - 1) // _LANE) * _LANE
    PB = _LANE
    grid = (ptot // PB,)          # plane chunks; "parallel" -> megacore-shardable
    n_branch = 5 if separate else 1

    gm_ph = _gm_phases(GM, ptot)                                   # (4, H, W, P)
    dets = [_detail_planes(x, ptot) for x in (LE, LD, SV, SH)]     # (H+1, W+1, P)

    kernel = _make_fused_kernel(
        [_FILT["LE"], _FILT["LD"], _FILT["SV"], _FILT["SH"]],
        _FILT["GM"], H, W, separate)

    # VMEM budget: double-buffered inputs/outputs + single-buffered scratch.
    blk_in = (4 * H * W + 4 * (H + 1) * (W + 1)) * PB * 4
    blk_out = n_branch * 16 * H * W * PB * 4
    blk_scr = n_branch * 4 * (H + 1) * (W + 1) * PB * 4
    vmem_need = 2 * (blk_in + blk_out) + blk_scr + (4 << 20)
    vmem_limit = int(min(max(vmem_need, 32 << 20), 128 << 20))
    # TODO(synk): for very large H*W on v7x (64 MiB VMEM/TC) add spatial tiling
    # with a one-row/col halo instead of whole-plane blocks.

    out = pl.pallas_call(
        kernel,
        out_shape=jax.ShapeDtypeStruct((n_branch * 16, H, W, ptot), jnp.float32),
        grid=grid,
        in_specs=[pl.BlockSpec((4, H, W, PB), lambda p: (0, 0, 0, p))]
                 + [pl.BlockSpec((H + 1, W + 1, PB), lambda p: (0, 0, p))
                    for _ in range(4)],
        out_specs=pl.BlockSpec((n_branch * 16, H, W, PB), lambda p: (0, 0, 0, p)),
        scratch_shapes=[pltpu.VMEM((n_branch * 4, H + 1, W + 1, PB), jnp.float32)],
        compiler_params=pltpu.CompilerParams(
            dimension_semantics=("parallel",),
            vmem_limit_bytes=vmem_limit),
    )(gm_ph, *dets)
    return _assemble(out, B, C, H, W)


@jax.jit
def _forward_sum(GM, LE, LD, SV, SH):
    return _fused_call(GM, LE, LD, SV, SH, separate=False)[0]


@jax.jit
def _forward_cat6(GM, LE, LD, SV, SH, primary):
    branches = _fused_call(GM, LE, LD, SV, SH, separate=True)   # (5, B, C, 4H, 4W)
    nb, B, C, Ho, Wo = branches.shape
    stacked = jnp.transpose(branches, (1, 0, 2, 3, 4)).reshape(B, nb * C, Ho, Wo)
    return jnp.concatenate([stacked, primary.astype(stacked.dtype)], axis=1)


# -------------------------------- module port ------------------------------ #
class LapSobGausUnPool:
    """JAX/Pallas port of Lap_Sob_GausUnPool (pool=False -> ConvTranspose2d)."""

    def __init__(self, in_channels, option_pool="sum"):
        self.in_channels = in_channels
        self.option_pool = option_pool
        # Fixed (non-learnable) filters, initialized deterministically in-script.
        self.f_gm, self.f_le, self.f_ld, self.f_sv, self.f_sh = (
            _FILT["GM"], _FILT["LE"], _FILT["LD"], _FILT["SV"], _FILT["SH"])

    def __call__(self, GM, LE, LD, SV, SH, primary=None):
        if self.option_pool == "sum":
            return _forward_sum(GM, LE, LD, SV, SH)
        elif self.option_pool == "cat6" and primary is not None:
            return _forward_cat6(GM, LE, LD, SV, SH, primary)
        else:
            raise NotImplementedError


# --------------------------- pure-JAX reference ----------------------------- #
def _ref_tconv(x, filt):
    C = x.shape[1]
    w = jnp.asarray(np.asarray(filt)[::-1, ::-1].copy(), jnp.float32)
    rhs = jnp.broadcast_to(w, (C, 1, 3, 3))
    return jax.lax.conv_general_dilated(
        x, rhs, window_strides=(1, 1), padding=[(1, 2), (1, 2)],
        lhs_dilation=(2, 2), rhs_dilation=(1, 1),
        dimension_numbers=("NCHW", "OIHW", "NCHW"),
        feature_group_count=C)


def _ref_forward_sum(GM, LE, LD, SV, SH):
    g = _FILT["GM"]
    return (_ref_tconv(GM, g)
            + _ref_tconv(_ref_tconv(LE, _FILT["LE"]), g)
            + _ref_tconv(_ref_tconv(LD, _FILT["LD"]), g)
            + _ref_tconv(_ref_tconv(SV, _FILT["SV"]), g)
            + _ref_tconv(_ref_tconv(SH, _FILT["SH"]), g))


def _ref_forward_cat6(GM, LE, LD, SV, SH, primary):
    g = _FILT["GM"]
    return jnp.concatenate([
        _ref_tconv(GM, g),
        _ref_tconv(_ref_tconv(LE, _FILT["LE"]), g),
        _ref_tconv(_ref_tconv(LD, _FILT["LD"]), g),
        _ref_tconv(_ref_tconv(SV, _FILT["SV"]), g),
        _ref_tconv(_ref_tconv(SH, _FILT["SH"]), g),
        primary], axis=1)


# ------------------------------------ main ---------------------------------- #
if __name__ == "__main__":
    B, C, H = 2, 4, 8
    key = jax.random.PRNGKey(0)
    kGM, kLE, kLD, kSV, kSH, kPR = jax.random.split(key, 6)
    # In the 'sum' branch GM sits at 2x the resolution of the detail inputs
    # (each detail tensor is upsampled twice, GM only once).
    GM = jax.random.normal(kGM, (B, C, 2 * H, 2 * H), jnp.float32)   # (2,4,16,16)
    LE = jax.random.normal(kLE, (B, C, H, H), jnp.float32)           # (2,4,8,8)
    LD = jax.random.normal(kLD, (B, C, H, H), jnp.float32)
    SV = jax.random.normal(kSV, (B, C, H, H), jnp.float32)
    SH = jax.random.normal(kSH, (B, C, H, H), jnp.float32)

    # ---- 'sum' branch ----
    mod = LapSobGausUnPool(C, option_pool="sum")
    out = jax.block_until_ready(mod(GM, LE, LD, SV, SH))
    assert out.shape == (B, C, 4 * H, 4 * H), out.shape
    ref = jax.block_until_ready(_ref_forward_sum(GM, LE, LD, SV, SH))
    err = float(jnp.max(jnp.abs(out - ref)))
    assert jnp.allclose(out, ref, atol=5e-4, rtol=5e-4), err

    # ---- 'cat6' branch ----
    primary = jax.random.normal(kPR, (B, C, 4 * H, 4 * H), jnp.float32)
    mod6 = LapSobGausUnPool(C, option_pool="cat6")
    out6 = jax.block_until_ready(mod6(GM, LE, LD, SV, SH, primary))
    assert out6.shape == (B, 6 * C, 4 * H, 4 * H), out6.shape
    ref6 = jax.block_until_ready(_ref_forward_cat6(GM, LE, LD, SV, SH, primary))
    err6 = float(jnp.max(jnp.abs(out6 - ref6)))
    assert jnp.allclose(out6, ref6, atol=5e-4, rtol=5e-4), err6

    print("KERNEL_OK")
</pallas_src>

<mosaic_0001>
module attributes {stable_mosaic.version = 11 : i64} {
  func.func @kernel(%arg0: i32, %arg1: memref<4x8x8x128xf32, #tpu.memory_space<vmem>>, %arg2: memref<9x9x128xf32, #tpu.memory_space<vmem>>, %arg3: memref<9x9x128xf32, #tpu.memory_space<vmem>>, %arg4: memref<9x9x128xf32, #tpu.memory_space<vmem>>, %arg5: memref<9x9x128xf32, #tpu.memory_space<vmem>>, %arg6: memref<16x8x8x128xf32, #tpu.memory_space<vmem>>, %arg7: memref<4x9x9x128xf32, #tpu.memory_space<vmem>>) attributes {dimension_semantics = [#tpu.dimension_semantics<parallel>], iteration_bounds = array<i64: 1>, scalar_prefetch = 0 : i64, scratch_operands = 1 : i64, tpu.core_type = #tpu.core_type<tc>, window_params = [{transform_indices = @transform_0, window_bounds = array<i64: 4, 8, 8, 128>}, {transform_indices = @transform_1, window_bounds = array<i64: 9, 9, 128>}, {transform_indices = @transform_2, window_bounds = array<i64: 9, 9, 128>}, {transform_indices = @transform_3, window_bounds = array<i64: 9, 9, 128>}, {transform_indices = @transform_4, window_bounds = array<i64: 9, 9, 128>}, {transform_indices = @transform_5, window_bounds = array<i64: 16, 8, 8, 128>}]} {
    %cst = arith.constant 0.000000e+00 : f32
    %0 = vector.broadcast %cst : f32 to vector<1x9x128xf32>
    %cst_0 = arith.constant 0.000000e+00 : f32
    %1 = vector.broadcast %cst_0 : f32 to vector<8x1x128xf32>
    %c0 = arith.constant 0 : index
    %c8 = arith.constant 8 : index
    %c0_1 = arith.constant 0 : index
    %c0_2 = arith.constant 0 : index
    %2 = vector.load %arg7[%c0, %c8, %c0_1, %c0_2] : memref<4x9x9x128xf32, #tpu.memory_space<vmem>>, vector<1x1x9x128xf32>
    %3 = vector.shape_cast %2 : vector<1x1x9x128xf32> to vector<1x9x128xf32>
    %4 = vector.shape_cast %0 : vector<1x9x128xf32> to vector<1x1x9x128xf32>
    tpu.vector_store %arg7[%c0, %c8, %c0_1, %c0_2], %4 {strides = array<i32>} : memref<4x9x9x128xf32, #tpu.memory_space<vmem>>, vector<1x1x9x128xf32>,
    %c0_3 = arith.constant 0 : index
    %c0_4 = arith.constant 0 : index
    %c8_5 = arith.constant 8 : index
    %c0_6 = arith.constant 0 : index
    %5 = vector.load %arg7[%c0_3, %c0_4, %c8_5, %c0_6] : memref<4x9x9x128xf32, #tpu.memory_space<vmem>>, vector<1x8x1x128xf32>
    %6 = vector.shape_cast %5 : vector<1x8x1x128xf32> to vector<8x1x128xf32>
    %7 = vector.shape_cast %1 : vector<8x1x128xf32> to vector<1x8x1x128xf32>
    tpu.vector_store %arg7[%c0_3, %c0_4, %c8_5, %c0_6], %7 {strides = array<i32>} : memref<4x9x9x128xf32, #tpu.memory_space<vmem>>, vector<1x8x1x128xf32>,
    %c1 = arith.constant 1 : index
    %c8_7 = arith.constant 8 : index
    %c0_8 = arith.constant 0 : index
    %c0_9 = arith.constant 0 : index
    %8 = vector.load %arg7[%c1, %c8_7, %c0_8, %c0_9] : memref<4x9x9x128xf32, #tpu.memory_space<vmem>>, vector<1x1x9x128xf32>
    %9 = vector.shape_cast %8 : vector<1x1x9x128xf32> to vector<1x9x128xf32>
    %10 = vector.shape_cast %0 : vector<1x9x128xf32> to vector<1x1x9x128xf32>
    tpu.vector_store %arg7[%c1, %c8_7, %c0_8, %c0_9], %10 {strides = array<i32>} : memref<4x9x9x128xf32, #tpu.memory_space<vmem>>, vector<1x1x9x128xf32>,
    %c1_10 = arith.constant 1 : index
    %c0_11 = arith.constant 0 : index
    %c8_12 = arith.constant 8 : index
    %c0_13 = arith.constant 0 : index
    %11 = vector.load %arg7[%c1_10, %c0_11, %c8_12, %c0_13] : memref<4x9x9x128xf32, #tpu.memory_space<vmem>>, vector<1x8x1x128xf32>
    %12 = vector.shape_cast %11 : vector<1x8x1x128xf32> to vector<8x1x128xf32>
    %13 = vector.shape_cast %1 : vector<8x1x128xf32> to vector<1x8x1x128xf32>
    tpu.vector_store %arg7[%c1_10, %c0_11, %c8_12, %c0_13], %13 {strides = array<i32>} : memref<4x9x9x128xf32, #tpu.memory_space<vmem>>, vector<1x8x1x128xf32>,
    %c2 = arith.constant 2 : index
    %c8_14 = arith.constant 8 : index
    %c0_15 = arith.constant 0 : index
    %c0_16 = arith.constant 0 : index
    %14 = vector.load %arg7[%c2, %c8_14, %c0_15, %c0_16] : memref<4x9x9x128xf32, #tpu.memory_space<vmem>>, vector<1x1x9x128xf32>
    %15 = vector.shape_cast %14 : vector<1x1x9x128xf32> to vector<1x9x128xf32>
    %16 = vector.shape_cast %0 : vector<1x9x128xf32> to vector<1x1x9x128xf32>
    tpu.vector_store %arg7[%c2, %c8_14, %c0_15, %c0_16], %16 {strides = array<i32>} : memref<4x9x9x128xf32, #tpu.memory_space<vmem>>, vector<1x1x9x128xf32>,
    %c2_17 = arith.constant 2 : index
    %c0_18 = arith.constant 0 : index
    %c8_19 = arith.constant 8 : index
    %c0_20 = arith.constant 0 : index
    %17 = vector.load %arg7[%c2_17, %c0_18, %c8_19, %c0_20] : memref<4x9x9x128xf32, #tpu.memory_space<vmem>>, vector<1x8x1x128xf32>
    %18 = vector.shape_cast %17 : vector<1x8x1x128xf32> to vector<8x1x128xf32>
    %19 = vector.shape_cast %1 : vector<8x1x128xf32> to vector<1x8x1x128xf32>
    tpu.vector_store %arg7[%c2_17, %c0_18, %c8_19, %c0_20], %19 {strides = array<i32>} : memref<4x9x9x128xf32, #tpu.memory_space<vmem>>, vector<1x8x1x128xf32>,
    %c3 = arith.constant 3 : index
    %c8_21 = arith.constant 8 : index
    %c0_22 = arith.constant 0 : index
    %c0_23 = arith.constant 0 : index
    %20 = vector.load %arg7[%c3, %c8_21, %c0_22, %c0_23] : memref<4x9x9x128xf32, #tpu.memory_space<vmem>>, vector<1x1x9x128xf32>
    %21 = vector.shape_cast %20 : vector<1x1x9x128xf32> to vector<1x9x128xf32>
    %22 = vector.shape_cast %0 : vector<1x9x128xf32> to vector<1x1x9x128xf32>
    tpu.vector_store %arg7[%c3, %c8_21, %c0_22, %c0_23], %22 {strides = array<i32>} : memref<4x9x9x128xf32, #tpu.memory_space<vmem>>, vector<1x1x9x128xf32>,
    %c3_24 = arith.constant 3 : index
    %c0_25 = arith.constant 0 : index
    %c8_26 = arith.constant 8 : index
    %c0_27 = arith.constant 0 : index
    %23 = vector.load %arg7[%c3_24, %c0_25, %c8_26, %c0_27] : memref<4x9x9x128xf32, #tpu.memory_space<vmem>>, vector<1x8x1x128xf32>
    %24 = vector.shape_cast %23 : vector<1x8x1x128xf32> to vector<8x1x128xf32>
    %25 = vector.shape_cast %1 : vector<8x1x128xf32> to vector<1x8x1x128xf32>
    tpu.vector_store %arg7[%c3_24, %c0_25, %c8_26, %c0_27], %25 {strides = array<i32>} : memref<4x9x9x128xf32, #tpu.memory_space<vmem>>, vector<1x8x1x128xf32>,
    %c0_28 = arith.constant 0 : index
    %c0_29 = arith.constant 0 : index
    %c0_30 = arith.constant 0 : index
    %c0_31 = arith.constant 0 : index
    %26 = vector.load %arg1[%c0_28, %c0_29, %c0_30, %c0_31] : memref<4x8x8x128xf32, #tpu.memory_space<vmem>>, vector<1x8x8x128xf32>
    %27 = vector.shape_cast %26 : vector<1x8x8x128xf32> to vector<8x8x128xf32>
    %c0_32 = arith.constant 0 : index
    %c0_33 = arith.constant 0 : index
    %c0_34 = arith.constant 0 : index
    %28 = vector.load %arg2[%c0_32, %c0_33, %c0_34] : memref<9x9x128xf32, #tpu.memory_space<vmem>>, vector<8x8x128xf32>
    %cst_35 = arith.constant -4.000000e+00 : f32
    %29 = vector.broadcast %cst_35 : f32 to vector<8x8x128xf32>
    %30 = arith.mulf %29, %28 : vector<8x8x128xf32>
    %31 = arith.addf %27, %30 : vector<8x8x128xf32>
    %c0_36 = arith.constant 0 : index
    %c0_37 = arith.constant 0 : index
    %c0_38 = arith.constant 0 : index
    %32 = vector.load %arg3[%c0_36, %c0_37, %c0_38] : memref<9x9x128xf32, #tpu.memory_space<vmem>>, vector<8x8x128xf32>
    %cst_39 = arith.constant -8.000000e+00 : f32
    %33 = vector.broadcast %cst_39 : f32 to vector<8x8x128xf32>
    %34 = arith.mulf %33, %32 : vector<8x8x128xf32>
    %35 = arith.addf %31, %34 : vector<8x8x128xf32>
    %c0_40 = arith.constant 0 : index
    %c0_41 = arith.constant 0 : index
    %c0_42 = arith.constant 0 : index
    %c0_43 = arith.constant 0 : index
    %36 = vector.load %arg7[%c0_40, %c0_41, %c0_42, %c0_43] : memref<4x9x9x128xf32, #tpu.memory_space<vmem>>, vector<1x8x8x128xf32>
    %37 = vector.shape_cast %36 : vector<1x8x8x128xf32> to vector<8x8x128xf32>
    %38 = vector.shape_cast %35 : vector<8x8x128xf32> to vector<1x8x8x128xf32>
    tpu.vector_store %arg7[%c0_40, %c0_41, %c0_42, %c0_43], %38 {strides = array<i32>} : memref<4x9x9x128xf32, #tpu.memory_space<vmem>>, vector<1x8x8x128xf32>,
    %c1_44 = arith.constant 1 : index
    %c0_45 = arith.constant 0 : index
    %c0_46 = arith.constant 0 : index
    %c0_47 = arith.constant 0 : index
    %39 = vector.load %arg1[%c1_44, %c0_45, %c0_46, %c0_47] : memref<4x8x8x128xf32, #tpu.memory_space<vmem>>, vector<1x8x8x128xf32>
    %40 = vector.shape_cast %39 : vector<1x8x8x128xf32> to vector<8x8x128xf32>
    %c0_48 = arith.constant 0 : index
    %c0_49 = arith.constant 0 : index
    %c0_50 = arith.constant 0 : index
    %41 = vector.load %arg2[%c0_48, %c0_49, %c0_50] : memref<9x9x128xf32, #tpu.memory_space<vmem>>, vector<8x8x128xf32>
    %c0_51 = arith.constant 0 : index
    %c1_52 = arith.constant 1 : index
    %c0_53 = arith.constant 0 : index
    %42 = vector.load %arg2[%c0_51, %c1_52, %c0_53] : memref<9x9x128xf32, #tpu.memory_space<vmem>>, vector<8x8x128xf32>
    %43 = arith.addf %41, %42 : vector<8x8x128xf32>
    %44 = arith.addf %40, %43 : vector<8x8x128xf32>
    %c0_54 = arith.constant 0 : index
    %c0_55 = arith.constant 0 : index
    %c0_56 = arith.constant 0 : index
    %45 = vector.load %arg3[%c0_54, %c0_55, %c0_56] : memref<9x9x128xf32, #tpu.memory_space<vmem>>, vector<8x8x128xf32>
    %c0_57 = arith.constant 0 : index
    %c1_58 = arith.constant 1 : index
    %c0_59 = arith.constant 0 : index
    %46 = vector.load %arg3[%c0_57, %c1_58, %c0_59] : memref<9x9x128xf32, #tpu.memory_space<vmem>>, vector<8x8x128xf32>
    %47 = arith.addf %45, %46 : vector<8x8x128xf32>
    %48 = arith.addf %44, %47 : vector<8x8x128xf32>
    %c0_60 = arith.constant 0 : index
    %c0_61 = arith.constant 0 : index
    %c0_62 = arith.constant 0 : index
    %49 = vector.load %arg4[%c0_60, %c0_61, %c0_62] : memref<9x9x128xf32, #tpu.memory_space<vmem>>, vector<8x8x128xf32>
    %c0_63 = arith.constant 0 : index
    %c1_64 = arith.constant 1 : index
    %c0_65 = arith.constant 0 : index
    %50 = vector.load %arg4[%c0_63, %c1_64, %c0_65] : memref<9x9x128xf32, #tpu.memory_space<vmem>>, vector<8x8x128xf32>
    %51 = arith.subf %49, %50 : vector<8x8x128xf32>
    %cst_66 = arith.constant 2.000000e+00 : f32
    %52 = vector.broadcast %cst_66 : f32 to vector<8x8x128xf32>
    %53 = arith.mulf %52, %51 : vector<8x8x128xf32>
    %54 = arith.addf %48, %53 : vector<8x8x128xf32>
    %c1_67 = arith.constant 1 : index
    %c0_68 = arith.constant 0 : index
    %c0_69 = arith.constant 0 : index
    %c0_70 = arith.constant 0 : index
    %55 = vector.load %arg7[%c1_67, %c0_68, %c0_69, %c0_70] : memref<4x9x9x128xf32, #tpu.memory_space<vmem>>, vector<1x8x8x128xf32>
    %56 = vector.shape_cast %55 : vector<1x8x8x128xf32> to vector<8x8x128xf32>
    %57 = vector.shape_cast %54 : vector<8x8x128xf32> to vector<1x8x8x128xf32>
    tpu.vector_store %arg7[%c1_67, %c0_68, %c0_69, %c0_70], %57 {strides = array<i32>} : memref<4x9x9x128xf32, #tpu.memory_space<vmem>>, vector<1x8x8x128xf32>,
    %c2_71 = arith.constant 2 : index
    %c0_72 = arith.constant 0 : index
    %c0_73 = arith.constant 0 : index
    %c0_74 = arith.constant 0 : index
    %58 = vector.load %arg1[%c2_71, %c0_72, %c0_73, %c0_74] : memref<4x8x8x128xf32, #tpu.memory_space<vmem>>, vector<1x8x8x128xf32>
    %59 = vector.shape_cast %58 : vector<1x8x8x128xf32> to vector<8x8x128xf32>
    %c0_75 = arith.constant 0 : index
    %c0_76 = arith.constant 0 : index
    %c0_77 = arith.constant 0 : index
    %60 = vector.load %arg2[%c0_75, %c0_76, %c0_77] : memref<9x9x128xf32, #tpu.memory_space<vmem>>, vector<8x8x128xf32>
    %c1_78 = arith.constant 1 : index
    %c0_79 = arith.constant 0 : index
    %c0_80 = arith.constant 0 : index
    %61 = vector.load %arg2[%c1_78, %c0_79, %c0_80] : memref<9x9x128xf32, #tpu.memory_space<vmem>>, vector<8x8x128xf32>
    %62 = arith.addf %60, %61 : vector<8x8x128xf32>
    %63 = arith.addf %59, %62 : vector<8x8x128xf32>
    %c0_81 = arith.constant 0 : index
    %c0_82 = arith.constant 0 : index
    %c0_83 = arith.constant 0 : index
    %64 = vector.load %arg3[%c0_81, %c0_82, %c0_83] : memref<9x9x128xf32, #tpu.memory_space<vmem>>, vector<8x8x128xf32>
    %c1_84 = arith.constant 1 : index
    %c0_85 = arith.constant 0 : index
    %c0_86 = arith.constant 0 : index
    %65 = vector.load %arg3[%c1_84, %c0_85, %c0_86] : memref<9x9x128xf32, #tpu.memory_space<vmem>>, vector<8x8x128xf32>
    %66 = arith.addf %64, %65 : vector<8x8x128xf32>
    %67 = arith.addf %63, %66 : vector<8x8x128xf32>
    %c0_87 = arith.constant 0 : index
    %c0_88 = arith.constant 0 : index
    %c0_89 = arith.constant 0 : index
    %68 = vector.load %arg5[%c0_87, %c0_88, %c0_89] : memref<9x9x128xf32, #tpu.memory_space<vmem>>, vector<8x8x128xf32>
    %c1_90 = arith.constant 1 : index
    %c0_91 = arith.constant 0 : index
    %c0_92 = arith.constant 0 : index
    %69 = vector.load %arg5[%c1_90, %c0_91, %c0_92] : memref<9x9x128xf32, #tpu.memory_space<vmem>>, vector<8x8x128xf32>
    %70 = arith.subf %68, %69 : vector<8x8x128xf32>
    %cst_93 = arith.constant 2.000000e+00 : f32
    %71 = vector.broadcast %cst_93 : f32 to vector<8x8x128xf32>
    %72 = arith.mulf %71, %70 : vector<8x8x128xf32>
    %73 = arith.addf %67, %72 : vector<8x8x128xf32>
    %c2_94 = arith.constant 2 : index
    %c0_95 = arith.constant 0 : index
    %c0_96 = arith.constant 0 : index
    %c0_97 = arith.constant 0 : index
    %74 = vector.load %arg7[%c2_94, %c0_95, %c0_96, %c0_97] : memref<4x9x9x128xf32, #tpu.memory_space<vmem>>, vector<1x8x8x128xf32>
    %75 = vector.shape_cast %74 : vector<1x8x8x128xf32> to vector<8x8x128xf32>
    %76 = vector.shape_cast %73 : vector<8x8x128xf32> to vector<1x8x8x128xf32>
    tpu.vector_store %arg7[%c2_94, %c0_95, %c0_96, %c0_97], %76 {strides = array<i32>} : memref<4x9x9x128xf32, #tpu.memory_space<vmem>>, vector<1x8x8x128xf32>,
    %c3_98 = arith.constant 3 : index
    %c0_99 = arith.constant 0 : index
    %c0_100 = arith.constant 0 : index
    %c0_101 = arith.constant 0 : index
    %77 = vector.load %arg1[%c3_98, %c0_99, %c0_100, %c0_101] : memref<4x8x8x128xf32, #tpu.memory_space<vmem>>, vector<1x8x8x128xf32>
    %78 = vector.shape_cast %77 : vector<1x8x8x128xf32> to vector<8x8x128xf32>
    %c0_102 = arith.constant 0 : index
    %c0_103 = arith.constant 0 : index
    %c0_104 = arith.constant 0 : index
    %79 = vector.load %arg3[%c0_102, %c0_103, %c0_104] : memref<9x9x128xf32, #tpu.memory_space<vmem>>, vector<8x8x128xf32>
    %c0_105 = arith.constant 0 : index
    %c1_106 = arith.constant 1 : index
    %c0_107 = arith.constant 0 : index
    %80 = vector.load %arg3[%c0_105, %c1_106, %c0_107] : memref<9x9x128xf32, #tpu.memory_space<vmem>>, vector<8x8x128xf32>
    %81 = arith.addf %79, %80 : vector<8x8x128xf32>
    %c1_108 = arith.constant 1 : index
    %c0_109 = arith.constant 0 : index
    %c0_110 = arith.constant 0 : index
    %82 = vector.load %arg3[%c1_108, %c0_109, %c0_110] : memref<9x9x128xf32, #tpu.memory_space<vmem>>, vector<8x8x128xf32>
    %83 = arith.addf %81, %82 : vector<8x8x128xf32>
    %c1_111 = arith.constant 1 : index
    %c1_112 = arith.constant 1 : index
    %c0_113 = arith.constant 0 : index
    %84 = vector.load %arg3[%c1_111, %c1_112, %c0_113] : memref<9x9x128xf32, #tpu.memory_space<vmem>>, vector<8x8x128xf32>
    %85 = arith.addf %83, %84 : vector<8x8x128xf32>
    %86 = arith.addf %78, %85 : vector<8x8x128xf32>
    %c0_114 = arith.constant 0 : index
    %c0_115 = arith.constant 0 : index
    %c0_116 = arith.constant 0 : index
    %87 = vector.load %arg4[%c0_114, %c0_115, %c0_116] : memref<9x9x128xf32, #tpu.memory_space<vmem>>, vector<8x8x128xf32>
    %c1_117 = arith.constant 1 : index
    %c0_118 = arith.constant 0 : index
    %c0_119 = arith.constant 0 : index
    %88 = vector.load %arg4[%c1_117, %c0_118, %c0_119] : memref<9x9x128xf32, #tpu.memory_space<vmem>>, vector<8x8x128xf32>
    %89 = arith.addf %87, %88 : vector<8x8x128xf32>
    %c0_120 = arith.constant 0 : index
    %c1_121 = arith.constant 1 : index
    %c0_122 = arith.constant 0 : index
    %90 = vector.load %arg4[%c0_120, %c1_121, %c0_122] : memref<9x9x128xf32, #tpu.memory_space<vmem>>, vector<8x8x128xf32>
    %c1_123 = arith.constant 1 : index
    %c1_124 = arith.constant 1 : index
    %c0_125 = arith.constant 0 : index
    %91 = vector.load %arg4[%c1_123, %c1_124, %c0_125] : memref<9x9x128xf32, #tpu.memory_space<vmem>>, vector<8x8x128xf32>
    %92 = arith.addf %90, %91 : vector<8x8x128xf32>
    %93 = arith.addf %86, %89 : vector<8x8x128xf32>
    %94 = arith.subf %93, %92 : vector<8x8x128xf32>
    %c0_126 = arith.constant 0 : index
    %c0_127 = arith.constant 0 : index
    %c0_128 = arith.constant 0 : index
    %95 = vector.load %arg5[%c0_126, %c0_127, %c0_128] : memref<9x9x128xf32, #tpu.memory_space<vmem>>, vector<8x8x128xf32>
    %c0_129 = arith.constant 0 : index
    %c1_130 = arith.constant 1 : index
    %c0_131 = arith.constant 0 : index
    %96 = vector.load %arg5[%c0_129, %c1_130, %c0_131] : memref<9x9x128xf32, #tpu.memory_space<vmem>>, vector<8x8x128xf32>
    %97 = arith.addf %95, %96 : vector<8x8x128xf32>
    %c1_132 = arith.constant 1 : index
    %c0_133 = arith.constant 0 : index
    %c0_134 = arith.constant 0 : index
    %98 = vector.load %arg5[%c1_132, %c0_133, %c0_134] : memref<9x9x128xf32, #tpu.memory_space<vmem>>, vector<8x8x128xf32>
    %c1_135 = arith.constant 1 : index
    %c1_136 = arith.constant 1 : index
    %c0_137 = arith.constant 0 : index
    %99 = vector.load %arg5[%c1_135, %c1_136, %c0_137] : memref<9x9x128xf32, #tpu.memory_space<vmem>>, vector<8x8x128xf32>
    %100 = arith.addf %98, %99 : vector<8x8x128xf32>
    %101 = arith.addf %94, %97 : vector<8x8x128xf32>
    %102 = arith.subf %101, %100 : vector<8x8x128xf32>
    %c3_138 = arith.constant 3 : index
    %c0_139 = arith.constant 0 : index
    %c0_140 = arith.constant 0 : index
    %c0_141 = arith.constant 0 : index
    %103 = vector.load %arg7[%c3_138, %c0_139, %c0_140, %c0_141] : memref<4x9x9x128xf32, #tpu.memory_space<vmem>>, vector<1x8x8x128xf32>
    %104 = vector.shape_cast %103 : vector<1x8x8x128xf32> to vector<8x8x128xf32>
    %105 = vector.shape_cast %102 : vector<8x8x128xf32> to vector<1x8x8x128xf32>
    tpu.vector_store %arg7[%c3_138, %c0_139, %c0_140, %c0_141], %105 {strides = array<i32>} : memref<4x9x9x128xf32, #tpu.memory_space<vmem>>, vector<1x8x8x128xf32>,
    %c0_142 = arith.constant 0 : index
    %c0_143 = arith.constant 0 : index
    %c0_144 = arith.constant 0 : index
    %c0_145 = arith.constant 0 : index
    %106 = vector.load %arg7[%c0_142, %c0_143, %c0_144, %c0_145] : memref<4x9x9x128xf32, #tpu.memory_space<vmem>>, vector<1x8x8x128xf32>
    %107 = vector.shape_cast %106 : vector<1x8x8x128xf32> to vector<8x8x128xf32>
    %cst_146 = arith.constant 0.204179958 : f32
    %108 = vector.broadcast %cst_146 : f32 to vector<8x8x128xf32>
    %109 = arith.mulf %108, %107 : vector<8x8x128xf32>
    %c0_147 = arith.constant 0 : index
    %c0_148 = arith.constant 0 : index
    %c0_149 = arith.constant 0 : index
    %c0_150 = arith.constant 0 : index
    %110 = vector.load %arg6[%c0_147, %c0_148, %c0_149, %c0_150] : memref<16x8x8x128xf32, #tpu.memory_space<vmem>>, vector<1x8x8x128xf32>
    %111 = vector.shape_cast %110 : vector<1x8x8x128xf32> to vector<8x8x128xf32>
    %112 = vector.shape_cast %109 : vector<8x8x128xf32> to vector<1x8x8x128xf32>
    tpu.vector_store %arg6[%c0_147, %c0_148, %c0_149, %c0_150], %112 {strides = array<i32>} : memref<16x8x8x128xf32, #tpu.memory_space<vmem>>, vector<1x8x8x128xf32>,
    %c0_151 = arith.constant 0 : index
    %c0_152 = arith.constant 0 : index
    %c0_153 = arith.constant 0 : index
    %c0_154 = arith.constant 0 : index
    %113 = vector.load %arg7[%c0_151, %c0_152, %c0_153, %c0_154] : memref<4x9x9x128xf32, #tpu.memory_space<vmem>>, vector<1x8x8x128xf32>
    %114 = vector.shape_cast %113 : vector<1x8x8x128xf32> to vector<8x8x128xf32>
    %c1_155 = arith.constant 1 : index
    %c0_156 = arith.constant 0 : index
    %c0_157 = arith.constant 0 : index
    %c0_158 = arith.constant 0 : index
    %115 = vector.load %arg7[%c1_155, %c0_156, %c0_157, %c0_158] : memref<4x9x9x128xf32, #tpu.memory_space<vmem>>, vector<1x8x8x128xf32>
    %116 = vector.shape_cast %115 : vector<1x8x8x128xf32> to vector<8x8x128xf32>
    %117 = arith.addf %114, %116 : vector<8x8x128xf32>
    %cst_159 = arith.constant 0.123841405 : f32
    %118 = vector.broadcast %cst_159 : f32 to vector<8x8x128xf32>
    %119 = arith.mulf %118, %117 : vector<8x8x128xf32>
    %c1_160 = arith.constant 1 : index
    %c0_161 = arith.constant 0 : index
    %c0_162 = arith.constant 0 : index
    %c0_163 = arith.constant 0 : index
    %120 = vector.load %arg6[%c1_160, %c0_161, %c0_162, %c0_163] : memref<16x8x8x128xf32, #tpu.memory_space<vmem>>, vector<1x8x8x128xf32>
    %121 = vector.shape_cast %120 : vector<1x8x8x128xf32> to vector<8x8x128xf32>
    %122 = vector.shape_cast %119 : vector<8x8x128xf32> to vector<1x8x8x128xf32>
    tpu.vector_store %arg6[%c1_160, %c0_161, %c0_162, %c0_163], %122 {strides = array<i32>} : memref<16x8x8x128xf32, #tpu.memory_space<vmem>>, vector<1x8x8x128xf32>,
    %c0_164 = arith.constant 0 : index
    %c0_165 = arith.constant 0 : index
    %c0_166 = arith.constant 0 : index
    %c0_167 = arith.constant 0 : index
    %123 = vector.load %arg7[%c0_164, %c0_165, %c0_166, %c0_167] : memref<4x9x9x128xf32, #tpu.memory_space<vmem>>, vector<1x8x8x128xf32>
    %124 = vector.shape_cast %123 : vector<1x8x8x128xf32> to vector<8x8x128xf32>
    %c2_168 = arith.constant 2 : index
    %c0_169 = arith.constant 0 : index
    %c0_170 = arith.constant 0 : index
    %c0_171 = arith.constant 0 : index
    %125 = vector.load %arg7[%c2_168, %c0_169, %c0_170, %c0_171] : memref<4x9x9x128xf32, #tpu.memory_space<vmem>>, vector<1x8x8x128xf32>
    %126 = vector.shape_cast %125 : vector<1x8x8x128xf32> to vector<8x8x128xf32>
    %127 = arith.addf %124, %126 : vector<8x8x128xf32>
    %cst_172 = arith.constant 0.123841405 : f32
    %128 = vector.broadcast %cst_172 : f32 to vector<8x8x128xf32>
    %129 = arith.mulf %128, %127 : vector<8x8x128xf32>
    %c4 = arith.constant 4 : index
    %c0_173 = arith.constant 0 : index
    %c0_174 = arith.constant 0 : index
    %c0_175 = arith.constant 0 : index
    %130 = vector.load %arg6[%c4, %c0_173, %c0_174, %c0_175] : memref<16x8x8x128xf32, #tpu.memory_space<vmem>>, vector<1x8x8x128xf32>
    %131 = vector.shape_cast %130 : vector<1x8x8x128xf32> to vector<8x8x128xf32>
    %132 = vector.shape_cast %129 : vector<8x8x128xf32> to vector<1x8x8x128xf32>
    tpu.vector_store %arg6[%c4, %c0_173, %c0_174, %c0_175], %132 {strides = array<i32>} : memref<16x8x8x128xf32, #tpu.memory_space<vmem>>, vector<1x8x8x128xf32>,
    %c0_176 = arith.constant 0 : index
    %c0_177 = arith.constant 0 : index
    %c0_178 = arith.constant 0 : index
    %c0_179 = arith.constant 0 : index
    %133 = vector.load %arg7[%c0_176, %c0_177, %c0_178, %c0_179] : memref<4x9x9x128xf32, #tpu.memory_space<vmem>>, vector<1x8x8x128xf32>
    %134 = vector.shape_cast %133 : vector<1x8x8x128xf32> to vector<8x8x128xf32>
    %c1_180 = arith.constant 1 : index
    %c0_181 = arith.constant 0 : index
    %c0_182 = arith.constant 0 : index
    %c0_183 = arith.constant 0 : index
    %135 = vector.load %arg7[%c1_180, %c0_181, %c0_182, %c0_183] : memref<4x9x9x128xf32, #tpu.memory_space<vmem>>, vector<1x8x8x128xf32>
    %136 = vector.shape_cast %135 : vector<1x8x8x128xf32> to vector<8x8x128xf32>
    %137 = arith.addf %134, %136 : vector<8x8x128xf32>
    %c2_184 = arith.constant 2 : index
    %c0_185 = arith.constant 0 : index
    %c0_186 = arith.constant 0 : index
    %c0_187 = arith.constant 0 : index
    %138 = vector.load %arg7[%c2_184, %c0_185, %c0_186, %c0_187] : memref<4x9x9x128xf32, #tpu.memory_space<vmem>>, vector<1x8x8x128xf32>
    %139 = vector.shape_cast %138 : vector<1x8x8x128xf32> to vector<8x8x128xf32>
    %140 = arith.addf %137, %139 : vector<8x8x128xf32>
    %c3_188 = arith.constant 3 : index
    %c0_189 = arith.constant 0 : index
    %c0_190 = arith.constant 0 : index
    %c0_191 = arith.constant 0 : index
    %141 = vector.load %arg7[%c3_188, %c0_189, %c0_190, %c0_191] : memref<4x9x9x128xf32, #tpu.memory_space<vmem>>, vector<1x8x8x128xf32>
    %142 = vector.shape_cast %141 : vector<1x8x8x128xf32> to vector<8x8x128xf32>
    %143 = arith.addf %140, %142 : vector<8x8x128xf32>
    %cst_192 = arith.constant 0.0751136094 : f32
    %144 = vector.broadcast %cst_192 : f32 to vector<8x8x128xf32>
    %145 = arith.mulf %144, %143 : vector<8x8x128xf32>
    %c5 = arith.constant 5 : index
    %c0_193 = arith.constant 0 : index
    %c0_194 = arith.constant 0 : index
    %c0_195 = arith.constant 0 : index
    %146 = vector.load %arg6[%c5, %c0_193, %c0_194, %c0_195] : memref<16x8x8x128xf32, #tpu.memory_space<vmem>>, vector<1x8x8x128xf32>
    %147 = vector.shape_cast %146 : vector<1x8x8x128xf32> to vector<8x8x128xf32>
    %148 = vector.shape_cast %145 : vector<8x8x128xf32> to vector<1x8x8x128xf32>
    tpu.vector_store %arg6[%c5, %c0_193, %c0_194, %c0_195], %148 {strides = array<i32>} : memref<16x8x8x128xf32, #tpu.memory_space<vmem>>, vector<1x8x8x128xf32>,
    %c1_196 = arith.constant 1 : index
    %c0_197 = arith.constant 0 : index
    %c0_198 = arith.constant 0 : index
    %c0_199 = arith.constant 0 : index
    %149 = vector.load %arg7[%c1_196, %c0_197, %c0_198, %c0_199] : memref<4x9x9x128xf32, #tpu.memory_space<vmem>>, vector<1x8x8x128xf32>
    %150 = vector.shape_cast %149 : vector<1x8x8x128xf32> to vector<8x8x128xf32>
    %cst_200 = arith.constant 0.204179958 : f32
    %151 = vector.broadcast %cst_200 : f32 to vector<8x8x128xf32>
    %152 = arith.mulf %151, %150 : vector<8x8x128xf32>
    %c2_201 = arith.constant 2 : index
    %c0_202 = arith.constant 0 : index
    %c0_203 = arith.constant 0 : index
    %c0_204 = arith.constant 0 : index
    %153 = vector.load %arg6[%c2_201, %c0_202, %c0_203, %c0_204] : memref<16x8x8x128xf32, #tpu.memory_space<vmem>>, vector<1x8x8x128xf32>
    %154 = vector.shape_cast %153 : vector<1x8x8x128xf32> to vector<8x8x128xf32>
    %155 = vector.shape_cast %152 : vector<8x8x128xf32> to vector<1x8x8x128xf32>
    tpu.vector_store %arg6[%c2_201, %c0_202, %c0_203, %c0_204], %155 {strides = array<i32>} : memref<16x8x8x128xf32, #tpu.memory_space<vmem>>, vector<1x8x8x128xf32>,
    %c1_205 = arith.constant 1 : index
    %c0_206 = arith.constant 0 : index
    %c0_207 = arith.constant 0 : index
    %c0_208 = arith.constant 0 : index
    %156 = vector.load %arg7[%c1_205, %c0_206, %c0_207, %c0_208] : memref<4x9x9x128xf32, #tpu.memory_space<vmem>>, vector<1x8x8x128xf32>
    %157 = vector.shape_cast %156 : vector<1x8x8x128xf32> to vector<8x8x128xf32>
    %c0_209 = arith.constant 0 : index
    %c0_210 = arith.constant 0 : index
    %c1_211 = arith.constant 1 : index
    %c0_212 = arith.constant 0 : index
    %158 = vector.load %arg7[%c0_209, %c0_210, %c1_211, %c0_212] : memref<4x9x9x128xf32, #tpu.memory_space<vmem>>, vector<1x8x8x128xf32>
    %159 = vector.shape_cast %158 : vector<1x8x8x128xf32> to vector<8x8x128xf32>
    %160 = arith.addf %157, %159 : vector<8x8x128xf32>
    %cst_213 = arith.constant 0.123841405 : f32
    %161 = vector.broadcast %cst_213 : f32 to vector<8x8x128xf32>
    %162 = arith.mulf %161, %160 : vector<8x8x128xf32>
    %c3_214 = arith.constant 3 : index
    %c0_215 = arith.constant 0 : index
    %c0_216 = arith.constant 0 : index
    %c0_217 = arith.constant 0 : index
    %163 = vector.load %arg6[%c3_214, %c0_215, %c0_216, %c0_217] : memref<16x8x8x128xf32, #tpu.memory_space<vmem>>, vector<1x8x8x128xf32>
    %164 = vector.shape_cast %163 : vector<1x8x8x128xf32> to vector<8x8x128xf32>
    %165 = vector.shape_cast %162 : vector<8x8x128xf32> to vector<1x8x8x128xf32>
    tpu.vector_store %arg6[%c3_214, %c0_215, %c0_216, %c0_217], %165 {strides = array<i32>} : memref<16x8x8x128xf32, #tpu.memory_space<vmem>>, vector<1x8x8x128xf32>,
    %c1_218 = arith.constant 1 : index
    %c0_219 = arith.constant 0 : index
    %c0_220 = arith.constant 0 : index
    %c0_221 = arith.constant 0 : index
    %166 = vector.load %arg7[%c1_218, %c0_219, %c0_220, %c0_221] : memref<4x9x9x128xf32, #tpu.memory_space<vmem>>, vector<1x8x8x128xf32>
    %167 = vector.shape_cast %166 : vector<1x8x8x128xf32> to vector<8x8x128xf32>
    %c3_222 = arith.constant 3 : index
    %c0_223 = arith.constant 0 : index
    %c0_224 = arith.constant 0 : index
    %c0_225 = arith.constant 0 : index
    %168 = vector.load %arg7[%c3_222, %c0_223, %c0_224, %c0_225] : memref<4x9x9x128xf32, #tpu.memory_space<vmem>>, vector<1x8x8x128xf32>
    %169 = vector.shape_cast %168 : vector<1x8x8x128xf32> to vector<8x8x128xf32>
    %170 = arith.addf %167, %169 : vector<8x8x128xf32>
    %cst_226 = arith.constant 0.123841405 : f32
    %171 = vector.broadcast %cst_226 : f32 to vector<8x8x128xf32>
    %172 = arith.mulf %171, %170 : vector<8x8x128xf32>
    %c6 = arith.constant 6 : index
    %c0_227 = arith.constant 0 : index
    %c0_228 = arith.constant 0 : index
    %c0_229 = arith.constant 0 : index
    %173 = vector.load %arg6[%c6, %c0_227, %c0_228, %c0_229] : memref<16x8x8x128xf32, #tpu.memory_space<vmem>>, vector<1x8x8x128xf32>
    %174 = vector.shape_cast %173 : vector<1x8x8x128xf32> to vector<8x8x128xf32>
    %175 = vector.shape_cast %172 : vector<8x8x128xf32> to vector<1x8x8x128xf32>
    tpu.vector_store %arg6[%c6, %c0_227, %c0_228, %c0_229], %175 {strides = array<i32>} : memref<16x8x8x128xf32, #tpu.memory_space<vmem>>, vector<1x8x8x128xf32>,
    %c1_230 = arith.constant 1 : index
    %c0_231 = arith.constant 0 : index
    %c0_232 = arith.constant 0 : index
    %c0_233 = arith.constant 0 : index
    %176 = vector.load %arg7[%c1_230, %c0_231, %c0_232, %c0_233] : memref<4x9x9x128xf32, #tpu.memory_space<vmem>>, vector<1x8x8x128xf32>
    %177 = vector.shape_cast %176 : vector<1x8x8x128xf32> to vector<8x8x128xf32>
    %c0_234 = arith.constant 0 : index
    %c0_235 = arith.constant 0 : index
    %c1_236 = arith.constant 1 : index
    %c0_237 = arith.constant 0 : index
    %178 = vector.load %arg7[%c0_234, %c0_235, %c1_236, %c0_237] : memref<4x9x9x128xf32, #tpu.memory_space<vmem>>, vector<1x8x8x128xf32>
    %179 = vector.shape_cast %178 : vector<1x8x8x128xf32> to vector<8x8x128xf32>
    %180 = arith.addf %177, %179 : vector<8x8x128xf32>
    %c3_238 = arith.constant 3 : index
    %c0_239 = arith.constant 0 : index
    %c0_240 = arith.constant 0 : index
    %c0_241 = arith.constant 0 : index
    %181 = vector.load %arg7[%c3_238, %c0_239, %c0_240, %c0_241] : memref<4x9x9x128xf32, #tpu.memory_space<vmem>>, vector<1x8x8x128xf32>
    %182 = vector.shape_cast %181 : vector<1x8x8x128xf32> to vector<8x8x128xf32>
    %183 = arith.addf %180, %182 : vector<8x8x128xf32>
    %c2_242 = arith.constant 2 : index
    %c0_243 = arith.constant 0 : index
    %c1_244 = arith.constant 1 : index
    %c0_245 = arith.constant 0 : index
    %184 = vector.load %arg7[%c2_242, %c0_243, %c1_244, %c0_245] : memref<4x9x9x128xf32, #tpu.memory_space<vmem>>, vector<1x8x8x128xf32>
    %185 = vector.shape_cast %184 : vector<1x8x8x128xf32> to vector<8x8x128xf32>
    %186 = arith.addf %183, %185 : vector<8x8x128xf32>
    %cst_246 = arith.constant 0.0751136094 : f32
    %187 = vector.broadcast %cst_246 : f32 to vector<8x8x128xf32>
    %188 = arith.mulf %187, %186 : vector<8x8x128xf32>
    %c7 = arith.constant 7 : index
    %c0_247 = arith.constant 0 : index
    %c0_248 = arith.constant 0 : index
    %c0_249 = arith.constant 0 : index
    %189 = vector.load %arg6[%c7, %c0_247, %c0_248, %c0_249] : memref<16x8x8x128xf32, #tpu.memory_space<vmem>>, vector<1x8x8x128xf32>
    %190 = vector.shape_cast %189 : vector<1x8x8x128xf32> to vector<8x8x128xf32>
    %191 = vector.shape_cast %188 : vector<8x8x128xf32> to vector<1x8x8x128xf32>
    tpu.vector_store %arg6[%c7, %c0_247, %c0_248, %c0_249], %191 {strides = array<i32>} : memref<16x8x8x128xf32, #tpu.memory_space<vmem>>, vector<1x8x8x128xf32>,
    %c2_250 = arith.constant 2 : index
    %c0_251 = arith.constant 0 : index
    %c0_252 = arith.constant 0 : index
    %c0_253 = arith.constant 0 : index
    %192 = vector.load %arg7[%c2_250, %c0_251, %c0_252, %c0_253] : memref<4x9x9x128xf32, #tpu.memory_space<vmem>>, vector<1x8x8x128xf32>
    %193 = vector.shape_cast %192 : vector<1x8x8x128xf32> to vector<8x8x128xf32>
    %cst_254 = arith.constant 0.204179958 : f32
    %194 = vector.broadcast %cst_254 : f32 to vector<8x8x128xf32>
    %195 = arith.mulf %194, %193 : vector<8x8x128xf32>
    %c8_255 = arith.constant 8 : index
    %c0_256 = arith.constant 0 : index
    %c0_257 = arith.constant 0 : index
    %c0_258 = arith.constant 0 : index
    %196 = vector.load %arg6[%c8_255, %c0_256, %c0_257, %c0_258] : memref<16x8x8x128xf32, #tpu.memory_space<vmem>>, vector<1x8x8x128xf32>
    %197 = vector.shape_cast %196 : vector<1x8x8x128xf32> to vector<8x8x128xf32>
    %198 = vector.shape_cast %195 : vector<8x8x128xf32> to vector<1x8x8x128xf32>
    tpu.vector_store %arg6[%c8_255, %c0_256, %c0_257, %c0_258], %198 {strides = array<i32>} : memref<16x8x8x128xf32, #tpu.memory_space<vmem>>, vector<1x8x8x128xf32>,
    %c2_259 = arith.constant 2 : index
    %c0_260 = arith.constant 0 : index
    %c0_261 = arith.constant 0 : index
    %c0_262 = arith.constant 0 : index
    %199 = vector.load %arg7[%c2_259, %c0_260, %c0_261, %c0_262] : memref<4x9x9x128xf32, #tpu.memory_space<vmem>>, vector<1x8x8x128xf32>
    %200 = vector.shape_cast %199 : vector<1x8x8x128xf32> to vector<8x8x128xf32>
    %c3_263 = arith.constant 3 : index
    %c0_264 = arith.constant 0 : index
    %c0_265 = arith.constant 0 : index
    %c0_266 = arith.constant 0 : index
    %201 = vector.load %arg7[%c3_263, %c0_264, %c0_265, %c0_266] : memref<4x9x9x128xf32, #tpu.memory_space<vmem>>, vector<1x8x8x128xf32>
    %202 = vector.shape_cast %201 : vector<1x8x8x128xf32> to vector<8x8x128xf32>
    %203 = arith.addf %200, %202 : vector<8x8x128xf32>
    %cst_267 = arith.constant 0.123841405 : f32
    %204 = vector.broadcast %cst_267 : f32 to vector<8x8x128xf32>
    %205 = arith.mulf %204, %203 : vector<8x8x128xf32>
    %c9 = arith.constant 9 : index
    %c0_268 = arith.constant 0 : index
    %c0_269 = arith.constant 0 : index
    %c0_270 = arith.constant 0 : index
    %206 = vector.load %arg6[%c9, %c0_268, %c0_269, %c0_270] : memref<16x8x8x128xf32, #tpu.memory_space<vmem>>, vector<1x8x8x128xf32>
    %207 = vector.shape_cast %206 : vector<1x8x8x128xf32> to vector<8x8x128xf32>
    %208 = vector.shape_cast %205 : vector<8x8x128xf32> to vector<1x8x8x128xf32>
    tpu.vector_store %arg6[%c9, %c0_268, %c0_269, %c0_270], %208 {strides = array<i32>} : memref<16x8x8x128xf32, #tpu.memory_space<vmem>>, vector<1x8x8x128xf32>,
    %c2_271 = arith.constant 2 : index
    %c0_272 = arith.constant 0 : index
    %c0_273 = arith.constant 0 : index
    %c0_274 = arith.constant 0 : index
    %209 = vector.load %arg7[%c2_271, %c0_272, %c0_273, %c0_274] : memref<4x9x9x128xf32, #tpu.memory_space<vmem>>, vector<1x8x8x128xf32>
    %210 = vector.shape_cast %209 : vector<1x8x8x128xf32> to vector<8x8x128xf32>
    %c0_275 = arith.constant 0 : index
    %c1_276 = arith.constant 1 : index
    %c0_277 = arith.constant 0 : index
    %c0_278 = arith.constant 0 : index
    %211 = vector.load %arg7[%c0_275, %c1_276, %c0_277, %c0_278] : memref<4x9x9x128xf32, #tpu.memory_space<vmem>>, vector<1x8x8x128xf32>
    %212 = vector.shape_cast %211 : vector<1x8x8x128xf32> to vector<8x8x128xf32>
    %213 = arith.addf %210, %212 : vector<8x8x128xf32>
    %cst_279 = arith.constant 0.123841405 : f32
    %214 = vector.broadcast %cst_279 : f32 to vector<8x8x128xf32>
    %215 = arith.mulf %214, %213 : vector<8x8x128xf32>
    %c12 = arith.constant 12 : index
    %c0_280 = arith.constant 0 : index
    %c0_281 = arith.constant 0 : index
    %c0_282 = arith.constant 0 : index
    %216 = vector.load %arg6[%c12, %c0_280, %c0_281, %c0_282] : memref<16x8x8x128xf32, #tpu.memory_space<vmem>>, vector<1x8x8x128xf32>
    %217 = vector.shape_cast %216 : vector<1x8x8x128xf32> to vector<8x8x128xf32>
    %218 = vector.shape_cast %215 : vector<8x8x128xf32> to vector<1x8x8x128xf32>
    tpu.vector_store %arg6[%c12, %c0_280, %c0_281, %c0_282], %218 {strides = array<i32>} : memref<16x8x8x128xf32, #tpu.memory_space<vmem>>, vector<1x8x8x128xf32>,
    %c2_283 = arith.constant 2 : index
    %c0_284 = arith.constant 0 : index
    %c0_285 = arith.constant 0 : index
    %c0_286 = arith.constant 0 : index
    %219 = vector.load %arg7[%c2_283, %c0_284, %c0_285, %c0_286] : memref<4x9x9x128xf32, #tpu.memory_space<vmem>>, vector<1x8x8x128xf32>
    %220 = vector.shape_cast %219 : vector<1x8x8x128xf32> to vector<8x8x128xf32>
    %c3_287 = arith.constant 3 : index
    %c0_288 = arith.constant 0 : index
    %c0_289 = arith.constant 0 : index
    %c0_290 = arith.constant 0 : index
    %221 = vector.load %arg7[%c3_287, %c0_288, %c0_289, %c0_290] : memref<4x9x9x128xf32, #tpu.memory_space<vmem>>, vector<1x8x8x128xf32>
    %222 = vector.shape_cast %221 : vector<1x8x8x128xf32> to vector<8x8x128xf32>
    %223 = arith.addf %220, %222 : vector<8x8x128xf32>
    %c0_291 = arith.constant 0 : index
    %c1_292 = arith.constant 1 : index
    %c0_293 = arith.constant 0 : index
    %c0_294 = arith.constant 0 : index
    %224 = vector.load %arg7[%c0_291, %c1_292, %c0_293, %c0_294] : memref<4x9x9x128xf32, #tpu.memory_space<vmem>>, vector<1x8x8x128xf32>
    %225 = vector.shape_cast %224 : vector<1x8x8x128xf32> to vector<8x8x128xf32>
    %226 = arith.addf %223, %225 : vector<8x8x128xf32>
    %c1_295 = arith.constant 1 : index
    %c1_296 = arith.constant 1 : index
    %c0_297 = arith.constant 0 : index
    %c0_298 = arith.constant 0 : index
    %227 = vector.load %arg7[%c1_295, %c1_296, %c0_297, %c0_298] : memref<4x9x9x128xf32, #tpu.memory_space<vmem>>, vector<1x8x8x128xf32>
    %228 = vector.shape_cast %227 : vector<1x8x8x128xf32> to vector<8x8x128xf32>
    %229 = arith.addf %226, %228 : vector<8x8x128xf32>
    %cst_299 = arith.constant 0.0751136094 : f32
    %230 = vector.broadcast %cst_299 : f32 to vector<8x8x128xf32>
    %231 = arith.mulf %230, %229 : vector<8x8x128xf32>
    %c13 = arith.constant 13 : index
    %c0_300 = arith.constant 0 : index
    %c0_301 = arith.constant 0 : index
    %c0_302 = arith.constant 0 : index
    %232 = vector.load %arg6[%c13, %c0_300, %c0_301, %c0_302] : memref<16x8x8x128xf32, #tpu.memory_space<vmem>>, vector<1x8x8x128xf32>
    %233 = vector.shape_cast %232 : vector<1x8x8x128xf32> to vector<8x8x128xf32>
    %234 = vector.shape_cast %231 : vector<8x8x128xf32> to vector<1x8x8x128xf32>
    tpu.vector_store %arg6[%c13, %c0_300, %c0_301, %c0_302], %234 {strides = array<i32>} : memref<16x8x8x128xf32, #tpu.memory_space<vmem>>, vector<1x8x8x128xf32>,
    %c3_303 = arith.constant 3 : index
    %c0_304 = arith.constant 0 : index
    %c0_305 = arith.constant 0 : index
    %c0_306 = arith.constant 0 : index
    %235 = vector.load %arg7[%c3_303, %c0_304, %c0_305, %c0_306] : memref<4x9x9x128xf32, #tpu.memory_space<vmem>>, vector<1x8x8x128xf32>
    %236 = vector.shape_cast %235 : vector<1x8x8x128xf32> to vector<8x8x128xf32>
    %cst_307 = arith.constant 0.204179958 : f32
    %237 = vector.broadcast %cst_307 : f32 to vector<8x8x128xf32>
    %238 = arith.mulf %237, %236 : vector<8x8x128xf32>
    %c10 = arith.constant 10 : index
    %c0_308 = arith.constant 0 : index
    %c0_309 = arith.constant 0 : index
    %c0_310 = arith.constant 0 : index
    %239 = vector.load %arg6[%c10, %c0_308, %c0_309, %c0_310] : memref<16x8x8x128xf32, #tpu.memory_space<vmem>>, vector<1x8x8x128xf32>
    %240 = vector.shape_cast %239 : vector<1x8x8x128xf32> to vector<8x8x128xf32>
    %241 = vector.shape_cast %238 : vector<8x8x128xf32> to vector<1x8x8x128xf32>
    tpu.vector_store %arg6[%c10, %c0_308, %c0_309, %c0_310], %241 {strides = array<i32>} : memref<16x8x8x128xf32, #tpu.memory_space<vmem>>, vector<1x8x8x128xf32>,
    %c3_311 = arith.constant 3 : index
    %c0_312 = arith.constant 0 : index
    %c0_313 = arith.constant 0 : index
    %c0_314 = arith.constant 0 : index
    %242 = vector.load %arg7[%c3_311, %c0_312, %c0_313, %c0_314] : memref<4x9x9x128xf32, #tpu.memory_space<vmem>>, vector<1x8x8x128xf32>
    %243 = vector.shape_cast %242 : vector<1x8x8x128xf32> to vector<8x8x128xf32>
    %c2_315 = arith.constant 2 : index
    %c0_316 = arith.constant 0 : index
    %c1_317 = arith.constant 1 : index
    %c0_318 = arith.constant 0 : index
    %244 = vector.load %arg7[%c2_315, %c0_316, %c1_317, %c0_318] : memref<4x9x9x128xf32, #tpu.memory_space<vmem>>, vector<1x8x8x128xf32>
    %245 = vector.shape_cast %244 : vector<1x8x8x128xf32> to vector<8x8x128xf32>
    %246 = arith.addf %243, %245 : vector<8x8x128xf32>
    %cst_319 = arith.constant 0.123841405 : f32
    %247 = vector.broadcast %cst_319 : f32 to vector<8x8x128xf32>
    %248 = arith.mulf %247, %246 : vector<8x8x128xf32>
    %c11 = arith.constant 11 : index
    %c0_320 = arith.constant 0 : index
    %c0_321 = arith.constant 0 : index
    %c0_322 = arith.constant 0 : index
    %249 = vector.load %arg6[%c11, %c0_320, %c0_321, %c0_322] : memref<16x8x8x128xf32, #tpu.memory_space<vmem>>, vector<1x8x8x128xf32>
    %250 = vector.shape_cast %249 : vector<1x8x8x128xf32> to vector<8x8x128xf32>
    %251 = vector.shape_cast %248 : vector<8x8x128xf32> to vector<1x8x8x128xf32>
    tpu.vector_store %arg6[%c11, %c0_320, %c0_321, %c0_322], %251 {strides = array<i32>} : memref<16x8x8x128xf32, #tpu.memory_space<vmem>>, vector<1x8x8x128xf32>,
    %c3_323 = arith.constant 3 : index
    %c0_324 = arith.constant 0 : index
    %c0_325 = arith.constant 0 : index
    %c0_326 = arith.constant 0 : index
    %252 = vector.load %arg7[%c3_323, %c0_324, %c0_325, %c0_326] : memref<4x9x9x128xf32, #tpu.memory_space<vmem>>, vector<1x8x8x128xf32>
    %253 = vector.shape_cast %252 : vector<1x8x8x128xf32> to vector<8x8x128xf32>
    %c1_327 = arith.constant 1 : index
    %c1_328 = arith.constant 1 : index
    %c0_329 = arith.constant 0 : index
    %c0_330 = arith.constant 0 : index
    %254 = vector.load %arg7[%c1_327, %c1_328, %c0_329, %c0_330] : memref<4x9x9x128xf32, #tpu.memory_space<vmem>>, vector<1x8x8x128xf32>
    %255 = vector.shape_cast %254 : vector<1x8x8x128xf32> to vector<8x8x128xf32>
    %256 = arith.addf %253, %255 : vector<8x8x128xf32>
    %cst_331 = arith.constant 0.123841405 : f32
    %257 = vector.broadcast %cst_331 : f32 to vector<8x8x128xf32>
    %258 = arith.mulf %257, %256 : vector<8x8x128xf32>
    %c14 = arith.constant 14 : index
    %c0_332 = arith.constant 0 : index
    %c0_333 = arith.constant 0 : index
    %c0_334 = arith.constant 0 : index
    %259 = vector.load %arg6[%c14, %c0_332, %c0_333, %c0_334] : memref<16x8x8x128xf32, #tpu.memory_space<vmem>>, vector<1x8x8x128xf32>
    %260 = vector.shape_cast %259 : vector<1x8x8x128xf32> to vector<8x8x128xf32>
    %261 = vector.shape_cast %258 : vector<8x8x128xf32> to vector<1x8x8x128xf32>
    tpu.vector_store %arg6[%c14, %c0_332, %c0_333, %c0_334], %261 {strides = array<i32>} : memref<16x8x8x128xf32, #tpu.memory_space<vmem>>, vector<1x8x8x128xf32>,
    %c3_335 = arith.constant 3 : index
    %c0_336 = arith.constant 0 : index
    %c0_337 = arith.constant 0 : index
    %c0_338 = arith.constant 0 : index
    %262 = vector.load %arg7[%c3_335, %c0_336, %c0_337, %c0_338] : memref<4x9x9x128xf32, #tpu.memory_space<vmem>>, vector<1x8x8x128xf32>
    %263 = vector.shape_cast %262 : vector<1x8x8x128xf32> to vector<8x8x128xf32>
    %c2_339 = arith.constant 2 : index
    %c0_340 = arith.constant 0 : index
    %c1_341 = arith.constant 1 : index
    %c0_342 = arith.constant 0 : index
    %264 = vector.load %arg7[%c2_339, %c0_340, %c1_341, %c0_342] : memref<4x9x9x128xf32, #tpu.memory_space<vmem>>, vector<1x8x8x128xf32>
    %265 = vector.shape_cast %264 : vector<1x8x8x128xf32> to vector<8x8x128xf32>
    %266 = arith.addf %263, %265 : vector<8x8x128xf32>
    %c1_343 = arith.constant 1 : index
    %c1_344 = arith.constant 1 : index
    %c0_345 = arith.constant 0 : index
    %c0_346 = arith.constant 0 : index
    %267 = vector.load %arg7[%c1_343, %c1_344, %c0_345, %c0_346] : memref<4x9x9x128xf32, #tpu.memory_space<vmem>>, vector<1x8x8x128xf32>
    %268 = vector.shape_cast %267 : vector<1x8x8x128xf32> to vector<8x8x128xf32>
    %269 = arith.addf %266, %268 : vector<8x8x128xf32>
    %c0_347 = arith.constant 0 : index
    %c1_348 = arith.constant 1 : index
    %c1_349 = arith.constant 1 : index
    %c0_350 = arith.constant 0 : index
    %270 = vector.load %arg7[%c0_347, %c1_348, %c1_349, %c0_350] : memref<4x9x9x128xf32, #tpu.memory_space<vmem>>, vector<1x8x8x128xf32>
    %271 = vector.shape_cast %270 : vector<1x8x8x128xf32> to vector<8x8x128xf32>
    %272 = arith.addf %269, %271 : vector<8x8x128xf32>
    %cst_351 = arith.constant 0.0751136094 : f32
    %273 = vector.broadcast %cst_351 : f32 to vector<8x8x128xf32>
    %274 = arith.mulf %273, %272 : vector<8x8x128xf32>
    %c15 = arith.constant 15 : index
    %c0_352 = arith.constant 0 : index
    %c0_353 = arith.constant 0 : index
    %c0_354 = arith.constant 0 : index
    %275 = vector.load %arg6[%c15, %c0_352, %c0_353, %c0_354] : memref<16x8x8x128xf32, #tpu.memory_space<vmem>>, vector<1x8x8x128xf32>
    %276 = vector.shape_cast %275 : vector<1x8x8x128xf32> to vector<8x8x128xf32>
    %277 = vector.shape_cast %274 : vector<8x8x128xf32> to vector<1x8x8x128xf32>
    tpu.vector_store %arg6[%c15, %c0_352, %c0_353, %c0_354], %277 {strides = array<i32>} : memref<16x8x8x128xf32, #tpu.memory_space<vmem>>, vector<1x8x8x128xf32>,
    return
  }
  func.func @transform_0(%arg0: i32) -> (i32, i32, i32, i32) {
    %c0_i32 = arith.constant 0 : i32
    %c0_i32_0 = arith.constant 0 : i32
    %c0_i32_1 = arith.constant 0 : i32
    %c0_i32_2 = arith.constant 0 : i32
    return %c0_i32, %c0_i32_0, %c0_i32_1, %arg0 : i32, i32, i32, i32
  }
  func.func @transform_1(%arg0: i32) -> (i32, i32, i32) {
    %c0_i32 = arith.constant 0 : i32
    %c0_i32_0 = arith.constant 0 : i32
    %c0_i32_1 = arith.constant 0 : i32
    return %c0_i32, %c0_i32_0, %arg0 : i32, i32, i32
  }
  func.func @transform_2(%arg0: i32) -> (i32, i32, i32) {
    %c0_i32 = arith.constant 0 : i32
    %c0_i32_0 = arith.constant 0 : i32
    %c0_i32_1 = arith.constant 0 : i32
    return %c0_i32, %c0_i32_0, %arg0 : i32, i32, i32
  }
  func.func @transform_3(%arg0: i32) -> (i32, i32, i32) {
    %c0_i32 = arith.constant 0 : i32
    %c0_i32_0 = arith.constant 0 : i32
    %c0_i32_1 = arith.constant 0 : i32
    return %c0_i32, %c0_i32_0, %arg0 : i32, i32, i32
  }
  func.func @transform_4(%arg0: i32) -> (i32, i32, i32) {
    %c0_i32 = arith.constant 0 : i32
    %c0_i32_0 = arith.constant 0 : i32
    %c0_i32_1 = arith.constant 0 : i32
    return %c0_i32, %c0_i32_0, %arg0 : i32, i32, i32
  }
  func.func @transform_5(%arg0: i32) -> (i32, i32, i32, i32) {
    %c0_i32 = arith.constant 0 : i32
    %c0_i32_0 = arith.constant 0 : i32
    %c0_i32_1 = arith.constant 0 : i32
    %c0_i32_2 = arith.constant 0 : i32
    return %c0_i32, %c0_i32_0, %c0_i32_1, %arg0 : i32, i32, i32, i32
  }
}

</mosaic_0001>

<bundles_post_ra>
// kernel: _forward_sum.1
= control target key start
LH: loop header
LB: loop body
LE: loop exit
PB: predicated region body
PF: predicated region fallthrough
CT: control target
= control target key end

     0   :  { %v1529_v3 = vmov 0.0   ;;  %s3022_s0 = inlined_call_operand.vmem [shape: f32[4,8,8,128], index: 0, kind: input, shape index: {}]   ;;  %s3023_s1 = inlined_call_operand.vmem [shape: f32[9,9,128], index: 1, kind: input, shape index: {}]   ;;  %s3024_s2 = inlined_call_operand.vmem [shape: f32[9,9,128], index: 2, kind: input, shape index: {}]   ;;  %s3025_s3 = inlined_call_operand.vmem [shape: f32[9,9,128], index: 3, kind: input, shape index: {}]   ;;  %s3026_s4 = inlined_call_operand.vmem [shape: f32[9,9,128], index: 4, kind: input, shape index: {}]   ;;  %s3027_s5 = inlined_call_operand.vmem [shape: f32[16,8,8,128], index: 5, kind: output, shape index: {}]  }
   0x1   :  { %v67_v0 = vld [vmem:[%s3022_s0] sm:$0xff]  ;;  %23 = vst [vmem:[#allocation2 + $0x8] sm:$0x1] %v1529_v3  ;;  %21 = vst [vmem:[#allocation2 + $0x80] sm:$0xff] %v1529_v3  ;;  %v68_v6 = vld [vmem:[%s3022_s0 + $0x8] sm:$0xff] }
   0x2   :  { %v1566_v1 = vld [vmem:[%s3023_s1] sm:$0xff]  ;;  %22 = vst [vmem:[#allocation2 + $0x88] sm:$0x1] %v1529_v3  ;;  %24 = vst [vmem:[#allocation2 + $0x18] sm:$0x1] %v1529_v3  ;;  %v1581_v7 = vld [vmem:[%s3023_s1 + $0x10] sm:$0xff] }
   0x3   :  { %v1571_v2 = vld [vmem:[%s3024_s2] sm:$0xff]  ;;  %25 = vst [vmem:[#allocation2 + $0x28] sm:$0x1] %v1529_v3  ;;  %26 = vst [vmem:[#allocation2 + $0x38] sm:$0x1] %v1529_v3  ;;  %v83_v4 = vmul.f32 -4.0, %v1566_v1  ;;  %v1605_v14 = vadd.f32 %v1581_v7, %v1566_v1 }
   0x4   :  { %27 = vst [vmem:[#allocation2 + $0x48] sm:$0x1] %v1529_v3  ;;  %28 = vst [vmem:[#allocation2 + $0x58] sm:$0x1] %v1529_v3  ;;  %v107_v5 = vmul.f32 -8.0, %v1571_v2  ;;  %v1586_v8 = vld [vmem:[%s3024_s2 + $0x10] sm:$0xff] }
   0x5   :  { %29 = vst [vmem:[#allocation2 + $0x68] sm:$0x1] %v1529_v3  ;;  %30 = vst [vmem:[#allocation2 + $0x78] sm:$0x1] %v1529_v3  ;;  %v84_v9 = vmul.f32 -4.0, %v1581_v7  ;;  %v108_v10 = vmul.f32 -8.0, %v1586_v8  ;;  %v1609_v15 = vadd.f32 %v1586_v8, %v1571_v2  ;;  %v91_v16 = vadd.f32 %v83_v4, %v67_v0 }
   0x6   :  { %47 = vst [vmem:[#allocation2 + $0x128] sm:$0x1] %v1529_v3  ;;  %48 = vst [vmem:[#allocation2 + $0x138] sm:$0x1] %v1529_v3  ;;  %v69_v11 = vld [vmem:[%s3022_s0 + $0x10] sm:$0xff]  ;;  %v1596_v12 = vld [vmem:[%s3023_s1 + $0x20] sm:$0xff] }
   0x7   :  { %49 = vst [vmem:[#allocation2 + $0x148] sm:$0x1] %v1529_v3  ;;  %50 = vst [vmem:[#allocation2 + $0x158] sm:$0x1] %v1529_v3  ;;  %v1601_v13 = vld [vmem:[%s3024_s2 + $0x20] sm:$0xff]  ;;  %v85_v17 = vmul.f32 -4.0, %v1596_v12  ;;  %v1628_v22 = vadd.f32 %v1596_v12, %v1581_v7  ;;  %v92_v23 = vadd.f32 %v84_v9, %v68_v6  ;;  %v115_v30 = vadd.f32 %v107_v5, %v91_v16 }
   0x8   :  { %51 = vst [vmem:[#allocation2 + $0x168] sm:$0x1] %v1529_v3  ;;  %52 = vst [vmem:[#allocation2 + $0x178] sm:$0x1] %v1529_v3  ;;  %v109_v18 = vmul.f32 -8.0, %v1601_v13  ;;  %v70_v19 = vld [vmem:[%s3022_s0 + $0x18] sm:$0xff]  ;;  %v1647_v29 = vadd.f32 %v1601_v13, %v1586_v8 }
   0x9   :  { %53 = vst [vmem:[#allocation2 + $0x188] sm:$0x1] %v1529_v3  ;;  %54 = vst [vmem:[#allocation2 + $0x198] sm:$0x1] %v1529_v3  ;;  %v1619_v20 = vld [vmem:[%s3023_s1 + $0x30] sm:$0xff]  ;;  %v71_v26 = vld [vmem:[%s3022_s0 + $0x20] sm:$0xff]  ;;  %v93_v31 = vadd.f32 %v85_v17, %v69_v11  ;;  %v116_v37 = vadd.f32 %v108_v10, %v92_v23 }
   0xa   :  { %v1624_v21 = vld [vmem:[%s3024_s2 + $0x30] sm:$0xff]  ;;  %v86_v24 = vmul.f32 -4.0, %v1619_v20  ;;  %v1638_v27 = vld [vmem:[%s3023_s1 + $0x40] sm:$0xff]  ;;  %v72_v34 = vld [vmem:[%s3022_s0 + $0x28] sm:$0xff]  ;;  %123 = vst [vmem:[#allocation2] sm:$0xff] %v115_v30  ;;  %v1739_v9 = vadd.f32 %v1619_v20, %v1596_v12 }
   0xb   :  { %v110_v25 = vmul.f32 -8.0, %v1624_v21  ;;  %v1643_v28 = vld [vmem:[%s3024_s2 + $0x40] sm:$0xff]  ;;  %v87_v32 = vmul.f32 -4.0, %v1638_v27  ;;  %v1657_v35 = vld [vmem:[%s3023_s1 + $0x50] sm:$0xff]  ;;  %v117_v44 = vadd.f32 %v109_v18, %v93_v31  ;;  %v74_v48 = vld [vmem:[%s3022_s0 + $0x38] sm:$0xff]  ;;  %124 = vst [vmem:[#allocation2 + $0x10] sm:$0xff] %v116_v37 }
   0xc   :  { %v111_v33 = vmul.f32 -8.0, %v1643_v28  ;;  %v1662_v36 = vld [vmem:[%s3024_s2 + $0x50] sm:$0xff]  ;;  %v94_v38 = vadd.f32 %v86_v24, %v70_v19  ;;  %v88_v39 = vmul.f32 -4.0, %v1657_v35  ;;  %v1672_v42 = vld [vmem:[%s3023_s1 + $0x60] sm:$0xff]  ;;  %v1312_v0 = vld [vmem:[%s3022_s0 + $0x48] sm:$0xff] }
   0xd   :  { %v112_v40 = vmul.f32 -8.0, %v1662_v36  ;;  %v73_v41 = vld [vmem:[%s3022_s0 + $0x30] sm:$0xff]  ;;  %v1677_v43 = vld [vmem:[%s3024_s2 + $0x60] sm:$0xff]  ;;  %v95_v45 = vadd.f32 %v87_v32, %v71_v26  ;;  %v89_v46 = vmul.f32 -4.0, %v1672_v42  ;;  %125 = vst [vmem:[#allocation2 + $0x20] sm:$0xff] %v117_v44 }
   0xe   :  { %v113_v47 = vmul.f32 -8.0, %v1677_v43  ;;  %v1687_v49 = vld [vmem:[%s3023_s1 + $0x70] sm:$0xff]  ;;  %v118_v51 = vadd.f32 %v110_v25, %v94_v38  ;;  %v96_v52 = vadd.f32 %v88_v39, %v72_v34  ;;  %v1311_v55 = vld [vmem:[%s3022_s0 + $0x40] sm:$0xff]  ;;  %v1314_v38 = vld [vmem:[%s3022_s0 + $0x58] sm:$0xff] }
   0xf   :  { %v1692_v50 = vld [vmem:[%s3024_s2 + $0x70] sm:$0xff]  ;;  %v90_v53 = vmul.f32 -4.0, %v1687_v49  ;;  %v148_v56 = vld [vmem:[%s3023_s1 + $0x1] sm:$0xff]  ;;  %v119_v58 = vadd.f32 %v111_v33, %v95_v45  ;;  %v97_v59 = vadd.f32 %v89_v46, %v73_v41 }
  0x10   :  { %v114_v54 = vmul.f32 -8.0, %v1692_v50  ;;  %v180_v57 = vld [vmem:[%s3024_s2 + $0x1] sm:$0xff]  ;;  %v156_v60 = vadd.f32 %v148_v56, %v1566_v1  ;;  %126 = vst [vmem:[#allocation2 + $0x30] sm:$0xff] %v118_v51  ;;  %v120_v3 = vadd.f32 %v112_v40, %v96_v52  ;;  %v149_v4 = vld [vmem:[%s3023_s1 + $0x11] sm:$0xff] }
  0x11   :  { %v1707_v61 = vadd.f32 %v180_v57, %v1571_v2  ;;  %v1712_v62 = vld [vmem:[%s3025_s3] sm:$0xff]  ;;  %v98_v1 = vadd.f32 %v90_v53, %v74_v48  ;;  %v1730_v5 = vld [vmem:[%s3024_s2 + $0x11] sm:$0xff]  ;;  %127 = vst [vmem:[#allocation2 + $0x40] sm:$0xff] %v119_v58  ;;  %v121_v10 = vadd.f32 %v113_v47, %v97_v59  ;;  %v157_v16 = vadd.f32 %v149_v4, %v1581_v7 }
  0x12   :  { %v1717_v63 = vld [vmem:[%s3025_s3 + $0x1] sm:$0xff]  ;;  %v1735_v6 = vld [vmem:[%s3025_s3 + $0x10] sm:$0xff]  ;;  %v164_v11 = vadd.f32 %v1311_v55, %v156_v60  ;;  %v1744_v17 = vadd.f32 %v1730_v5, %v1586_v8  ;;  %128 = vst [vmem:[#allocation2 + $0x50] sm:$0xff] %v120_v3 }
  0x13   :  { %v220_v2 = vsub.f32 %v1712_v62, %v1717_v63  ;;  %v1749_v18 = vld [vmem:[%s3025_s3 + $0x11] sm:$0xff]  ;;  %v150_v23 = vld [vmem:[%s3023_s1 + $0x21] sm:$0xff]  ;;  %v122_v24 = vadd.f32 %v114_v54, %v98_v1  ;;  %129 = vst [vmem:[#allocation2 + $0x60] sm:$0xff] %v121_v10  ;;  %v165_v34 = vadd.f32 %v1312_v0, %v157_v16 }
  0x14   :  { %v1313_v19 = vld [vmem:[%s3022_s0 + $0x50] sm:$0xff]  ;;  %v221_v25 = vsub.f32 %v1735_v6, %v1749_v18  ;;  %v158_v26 = vadd.f32 %v150_v23, %v1596_v12  ;;  %v1763_v30 = vld [vmem:[%s3024_s2 + $0x21] sm:$0xff]  ;;  %v196_v33 = vadd.f32 %v1707_v61, %v164_v11 }
  0x15   :  { %v228_v7 = vmul.f32 2.0, %v220_v2  ;;  %v1768_v31 = vld [vmem:[%s3025_s3 + $0x20] sm:$0xff]  ;;  %v1778_v12 = vadd.f32 %v1763_v30, %v1601_v13  ;;  %v151_v39 = vld [vmem:[%s3023_s1 + $0x31] sm:$0xff]  ;;  %130 = vst [vmem:[#allocation2 + $0x70] sm:$0xff] %v122_v24  ;;  %v197_v53 = vadd.f32 %v1744_v17, %v165_v34  ;;  %v1316_v2 = vld [vmem:[%s3022_s0 + $0x68] sm:$0xff] }
  0x16   :  { %v1773_v32 = vld [vmem:[%s3025_s3 + $0x21] sm:$0xff]  ;;  %v1791_v40 = vld [vmem:[%s3024_s2 + $0x31] sm:$0xff]  ;;  %v229_v41 = vmul.f32 2.0, %v221_v25  ;;  %v166_v44 = vadd.f32 %v1313_v19, %v158_v26  ;;  %v159_v45 = vadd.f32 %v151_v39, %v1619_v20 }
  0x17   :  { %v222_v37 = vsub.f32 %v1768_v31, %v1773_v32  ;;  %v1796_v46 = vadd.f32 %v1791_v40, %v1624_v21  ;;  %v1801_v47 = vld [vmem:[%s3025_s3 + $0x30] sm:$0xff]  ;;  %v1315_v51 = vld [vmem:[%s3022_s0 + $0x60] sm:$0xff]  ;;  %v1811_v52 = vadd.f32 %v228_v7, %v196_v33 }
  0x18   :  { %v1806_v48 = vld [vmem:[%s3025_s3 + $0x31] sm:$0xff]  ;;  %v152_v56 = vld [vmem:[%s3023_s1 + $0x41] sm:$0xff]  ;;  %v198_v59 = vadd.f32 %v1778_v12, %v166_v44  ;;  %v167_v60 = vadd.f32 %v1314_v38, %v159_v45  ;;  %v1847_v10 = vadd.f32 %v229_v41, %v197_v53 }
  0x19   :  { %3055 = vst [vmem:[#allocation3_spill] sm:$0xff] %v1811_v52  ;;  %v230_v54 = vmul.f32 2.0, %v222_v37  ;;  %v223_v55 = vsub.f32 %v1801_v47, %v1806_v48  ;;  %v1822_v57 = vld [vmem:[%s3024_s2 + $0x41] sm:$0xff]  ;;  %v160_v0 = vadd.f32 %v152_v56, %v1638_v27  ;;  %v153_v4 = vld [vmem:[%s3023_s1 + $0x51] sm:$0xff]  ;;  %244 = vst [vmem:[#allocation2 + $0x90] sm:$0xff] %v1811_v52 }
  0x1a   :  { %v1827_v58 = vld [vmem:[%s3025_s3 + $0x40] sm:$0xff]  ;;  %v1833_v3 = vadd.f32 %v1822_v57, %v1643_v28  ;;  %3056 = vst [vmem:[#allocation4_spill] sm:$0xff] %v1847_v10  ;;  %v161_v19 = vadd.f32 %v153_v4, %v1657_v35  ;;  %v1855_v23 = vld [vmem:[%s3024_s2 + $0x51] sm:$0xff]  ;;  %v199_v26 = vadd.f32 %v1796_v46, %v167_v60  ;;  %245 = vst [vmem:[#allocation2 + $0xa0] sm:$0xff] %v1847_v10 }
  0x1b   :  { %v1838_v1 = vld [vmem:[%s3025_s3 + $0x41] sm:$0xff]  ;;  %v231_v11 = vmul.f32 2.0, %v223_v55  ;;  %v1860_v24 = vld [vmem:[%s3025_s3 + $0x50] sm:$0xff]  ;;  %v1867_v25 = vadd.f32 %v230_v54, %v198_v59  ;;  %v168_v33 = vadd.f32 %v1315_v51, %v160_v0  ;;  %v1872_v34 = vadd.f32 %v1855_v23, %v1662_v36  ;;  %v1318_v55 = vld [vmem:[%s3022_s0 + $0x78] sm:$0xff] }
  0x1c   :  { %v224_v16 = vsub.f32 %v1827_v58, %v1838_v1  ;;  %v1865_v7 = vld [vmem:[%s3025_s3 + $0x51] sm:$0xff]  ;;  %v154_v38 = vld [vmem:[%s3023_s1 + $0x61] sm:$0xff]  ;;  %v169_v44 = vadd.f32 %v1316_v2, %v161_v19 }
  0x1d   :  { %3057 = vst [vmem:[#allocation5_spill] sm:$0xff] %v1867_v25  ;;  %v1317_v37 = vld [vmem:[%s3022_s0 + $0x70] sm:$0xff]  ;;  %v1883_v39 = vld [vmem:[%s3024_s2 + $0x61] sm:$0xff]  ;;  %v225_v45 = vsub.f32 %v1860_v24, %v1865_v7  ;;  %v162_v51 = vadd.f32 %v154_v38, %v1672_v42  ;;  %246 = vst [vmem:[#allocation2 + $0xb0] sm:$0xff] %v1867_v25  ;;  %v1903_v56 = vadd.f32 %v231_v11, %v199_v26 }
  0x1e   :  { %3058 = vst [vmem:[#allocation6_spill] sm:$0xff] %v1883_v39  ;;  %v232_v41 = vmul.f32 2.0, %v224_v16  ;;  %v1892_v53 = vld [vmem:[%s3025_s3 + $0x60] sm:$0xff]  ;;  %v200_v59 = vadd.f32 %v1833_v3, %v168_v33  ;;  %v1908_v60 = vadd.f32 %v1883_v39, %v1677_v43  ;;  %v155_v2 = vld [vmem:[%s3023_s1 + $0x71] sm:$0xff]  ;;  %v201_v16 = vadd.f32 %v1872_v34, %v169_v44  ;;  %v1320_v52 = vld [vmem:[%s3022_s0 + $0x88] sm:$0xff] }
  0x1f   :  { %v1897_v54 = vld [vmem:[%s3025_s3 + $0x61] sm:$0xff]  ;;  %3060 = vst [vmem:[#allocation8_spill] sm:$0xff] %v1903_v56  ;;  %v1918_v4 = vld [vmem:[%s3024_s2 + $0x71] sm:$0xff]  ;;  %v233_v19 = vmul.f32 2.0, %v225_v45  ;;  %v170_v26 = vadd.f32 %v1317_v37, %v162_v51  ;;  %v163_v33 = vadd.f32 %v155_v2, %v1687_v49  ;;  %247 = vst [vmem:[#allocation2 + $0xc0] sm:$0xff] %v1903_v56 }
  0x20   :  { %3059 = vst [vmem:[#allocation7_spill] sm:$0xff] %v1897_v54  ;;  %v226_v0 = vsub.f32 %v1892_v53, %v1897_v54  ;;  %3061 = vst [vmem:[#allocation9_spill] sm:$0xff] %v1918_v4  ;;  %v1923_v11 = vld [vmem:[%s3025_s3 + $0x70] sm:$0xff]  ;;  %v1319_v25 = vld [vmem:[%s3022_s0 + $0x80] sm:$0xff]  ;;  %v1941_v44 = vadd.f32 %v232_v41, %v200_v59  ;;  %v1945_v45 = vadd.f32 %v1918_v4, %v1692_v50 }
  0x21   :  { %3062 = vst [vmem:[#allocation10_spill] sm:$0xff] %v1923_v11  ;;  %v1930_v38 = vld [vmem:[%s3025_s3 + $0x71] sm:$0xff]  ;;  %v1938_v10 = vld [vmem:[%s3026_s4] sm:$0xff]  ;;  %v1962_v59 = vadd.f32 %v233_v19, %v201_v16  ;;  %v171_v56 = vadd.f32 %v1318_v55, %v163_v33  ;;  %v286_v4 = vadd.f32 %v1319_v25, %v1605_v14  ;;  %v287_v54 = vadd.f32 %v1320_v52, %v1628_v22 }
  0x22   :  { %3063 = vst [vmem:[#allocation11_spill] sm:$0xff] %v1930_v38  ;;  %3064 = vst [vmem:[#allocation12_spill] sm:$0xff] %v1941_v44  ;;  %v234_v37 = vmul.f32 2.0, %v226_v0  ;;  %v227_v51 = vsub.f32 %v1923_v11, %v1930_v38  ;;  %v1952_v2 = vld [vmem:[%s3026_s4 + $0x10] sm:$0xff]  ;;  %v1960_v41 = vld [vmem:[%s3026_s4 + $0x20] sm:$0xff]  ;;  %v202_v0 = vadd.f32 %v1908_v60, %v170_v26 }
  0x23   :  { %3065 = vst [vmem:[#allocation13_spill] sm:$0xff] %v1962_v59  ;;  %v1321_v38 = vld [vmem:[%s3022_s0 + $0x90] sm:$0xff]  ;;  %248 = vst [vmem:[#allocation2 + $0xd0] sm:$0xff] %v1941_v44  ;;  %v344_v39 = vsub.f32 %v1938_v10, %v1952_v2  ;;  %v345_v16 = vsub.f32 %v1952_v2, %v1960_v41  ;;  %v203_v25 = vadd.f32 %v1945_v45, %v171_v56  ;;  %v1989_v22 = vld [vmem:[%s3026_s4 + $0x40] sm:$0xff] }
  0x24   :  { %v235_v11 = vmul.f32 2.0, %v227_v51  ;;  %v1978_v55 = vld [vmem:[%s3026_s4 + $0x30] sm:$0xff]  ;;  %249 = vst [vmem:[#allocation2 + $0xe0] sm:$0xff] %v1962_v59  ;;  %v1981_v14 = vadd.f32 %v234_v37, %v202_v0  ;;  %v319_v19 = vadd.f32 %v1609_v15, %v286_v4  ;;  %v288_v26 = vadd.f32 %v1321_v38, %v1739_v9  ;;  %v1322_v56 = vld [vmem:[%s3022_s0 + $0x98] sm:$0xff]  ;;  %v2023_v0 = vld [vmem:[%s3026_s4 + $0x60] sm:$0xff] }
  0x25   :  { %v352_v52 = vmul.f32 2.0, %v344_v39  ;;  %v320_v33 = vadd.f32 %v1647_v29, %v287_v54  ;;  %v353_v51 = vmul.f32 2.0, %v345_v16  ;;  %v313_v59 = vadd.f32 %v1624_v21, %v1601_v13  ;;  %v2009_v54 = vld [vmem:[%s3026_s4 + $0x50] sm:$0xff] }
  0x26   :  { %3066 = vst [vmem:[#allocation14_spill] sm:$0xff] %v1981_v14  ;;  %250 = vst [vmem:[#allocation2 + $0xf0] sm:$0xff] %v1981_v14  ;;  %v1998_v15 = vadd.f32 %v235_v11, %v203_v25  ;;  %v346_v9 = vsub.f32 %v1960_v41, %v1978_v55  ;;  %v281_v39 = vadd.f32 %v1638_v27, %v1619_v20  ;;  %v1323_v20 = vld [vmem:[%s3022_s0 + $0xa0] sm:$0xff] }
  0x27   :  { %v314_v29 = vadd.f32 %v1643_v28, %v1624_v21  ;;  %v2011_v4 = vadd.f32 %v352_v52, %v319_v19  ;;  %v2013_v38 = vadd.f32 %v353_v51, %v320_v33  ;;  %v321_v11 = vadd.f32 %v313_v59, %v288_v26  ;;  %v1324_v26 = vld [vmem:[%s3022_s0 + $0xa8] sm:$0xff] }
  0x28   :  { %3067 = vst [vmem:[#allocation15_spill] sm:$0xff] %v1998_v15  ;;  %v347_v37 = vsub.f32 %v1978_v55, %v1989_v22  ;;  %251 = vst [vmem:[#allocation2 + $0x100] sm:$0xff] %v1998_v15  ;;  %v354_v16 = vmul.f32 2.0, %v346_v9  ;;  %v289_v25 = vadd.f32 %v1322_v56, %v281_v39  ;;  %v282_v19 = vadd.f32 %v1657_v35, %v1638_v27  ;;  %v2044_v56 = vld [vmem:[%s3026_s4 + $0x70] sm:$0xff] }
  0x29   :  { %3068 = vst [vmem:[#allocation16_spill] sm:$0xff] %v2011_v4  ;;  %3069 = vst [vmem:[#allocation17_spill] sm:$0xff] %v2013_v38  ;;  %v315_v59 = vadd.f32 %v1662_v36, %v1643_v28  ;;  %v348_v33 = vsub.f32 %v1989_v22, %v2009_v54  ;;  %v283_v51 = vadd.f32 %v1672_v42, %v1657_v35  ;;  %v1334_v35 = vld [vmem:[%s3023_s1 + $0x80] sm:$0xff] }
  0x2a   :  { %368 = vst [vmem:[#allocation2 + $0x120] sm:$0xff] %v2011_v4  ;;  %369 = vst [vmem:[#allocation2 + $0x130] sm:$0xff] %v2013_v38  ;;  %v355_v52 = vmul.f32 2.0, %v347_v37  ;;  %v316_v27 = vadd.f32 %v1677_v43, %v1662_v36  ;;  %v2046_v9 = vadd.f32 %v354_v16, %v321_v11  ;;  %v322_v39 = vadd.f32 %v314_v29, %v289_v25  ;;  %v1325_v38 = vld [vmem:[%s3022_s0 + $0xb0] sm:$0xff]  ;;  %v2063_v11 = vld [vmem:[%s3026_s4 + $0x80] sm:$0xff] }
  0x2b   :  { %v290_v4 = vadd.f32 %v1323_v20, %v282_v19  ;;  %v349_v37 = vsub.f32 %v2009_v54, %v2023_v0  ;;  %v356_v15 = vmul.f32 2.0, %v348_v33  ;;  %v291_v14 = vadd.f32 %v1324_v26, %v283_v51  ;;  %v2076_v26 = vld [vmem:[%s3024_s2 + $0x80] sm:$0xff] }
  0x2c   :  { %3070 = vst [vmem:[#allocation18_spill] sm:$0xff] %v2046_v9  ;;  %v284_v44 = vadd.f32 %v1687_v49, %v1672_v42  ;;  %v317_v29 = vadd.f32 %v1692_v50, %v1677_v43  ;;  %370 = vst [vmem:[#allocation2 + $0x140] sm:$0xff] %v2046_v9  ;;  %v2066_v20 = vadd.f32 %v355_v52, %v322_v39  ;;  %v1326_v42 = vld [vmem:[%s3022_s0 + $0xb8] sm:$0xff] }
  0x2d   :  { %v323_v16 = vadd.f32 %v315_v59, %v290_v4  ;;  %v357_v25 = vmul.f32 2.0, %v349_v37  ;;  %v350_v19 = vsub.f32 %v2023_v0, %v2044_v56  ;;  %v324_v33 = vadd.f32 %v316_v27, %v291_v14  ;;  %v522_v59 = vld [vmem:[%s3026_s4 + $0x1] sm:$0xff] }
  0x2e   :  { %v292_v51 = vadd.f32 %v1325_v38, %v284_v44  ;;  %v285_v9 = vadd.f32 %v1334_v35, %v1687_v49  ;;  %v318_v4 = vadd.f32 %v2076_v26, %v1692_v50  ;;  %371 = vst [vmem:[#allocation2 + $0x150] sm:$0xff] %v2066_v20  ;;  %v351_v37 = vsub.f32 %v2044_v56, %v2063_v11  ;;  %v1399_v49 = vld [vmem:[%s3026_s4 + $0x11] sm:$0xff] }
  0x2f   :  { %v2085_v52 = vadd.f32 %v356_v15, %v323_v16  ;;  %v358_v39 = vmul.f32 2.0, %v350_v19  ;;  %v417_v44 = vadd.f32 %v1707_v61, %v1586_v8  ;;  %v2094_v14 = vadd.f32 %v357_v25, %v324_v33  ;;  %v1351_v15 = vld [vmem:[%s3022_s0 + $0xc0] sm:$0xff]  ;;  %v1401_v33 = vld [vmem:[%s3026_s4 + $0x31] sm:$0xff] }
  0x30   :  { %v325_v38 = vadd.f32 %v317_v29, %v292_v51  ;;  %v293_v27 = vadd.f32 %v1326_v42, %v285_v9  ;;  %v466_v35 = vadd.f32 %v1735_v6, %v1712_v62  ;;  %v1400_v16 = vld [vmem:[%s3026_s4 + $0x21] sm:$0xff]  ;;  %v359_v8 = vmul.f32 2.0, %v351_v37  ;;  %v1354_v37 = vld [vmem:[%s3022_s0 + $0xd8] sm:$0xff] }
  0x31   :  { %372 = vst [vmem:[#allocation2 + $0x160] sm:$0xff] %v2085_v52  ;;  %v433_v61 = vadd.f32 %v417_v44, %v1730_v5  ;;  %v490_v29 = vadd.f32 %v1749_v18, %v1717_v63  ;;  %v530_v9 = vadd.f32 %v522_v59, %v1938_v10  ;;  %373 = vst [vmem:[#allocation2 + $0x170] sm:$0xff] %v2094_v14  ;;  %v1352_v63 = vld [vmem:[%s3022_s0 + $0xc8] sm:$0xff] }
  0x32   :  { %v2110_v25 = vadd.f32 %v358_v39, %v325_v38  ;;  %v326_v19 = vadd.f32 %v318_v4, %v293_v27  ;;  %v554_v62 = vadd.f32 %v1399_v49, %v1952_v2  ;;  %v418_v42 = vadd.f32 %v1744_v17, %v1601_v13 }
  0x33   :  { %v441_v5 = vadd.f32 %v1351_v15, %v433_v61  ;;  %v467_v10 = vadd.f32 %v1768_v31, %v1735_v6  ;;  %v491_v51 = vadd.f32 %v1773_v32, %v1749_v18  ;;  %v555_v2 = vadd.f32 %v1400_v16, %v1960_v41  ;;  %v1402_v6 = vld [vmem:[%s3026_s4 + $0x41] sm:$0xff]  ;;  %v1353_v18 = vld [vmem:[%s3022_s0 + $0xd0] sm:$0xff] }
  0x34   :  { %374 = vst [vmem:[#allocation2 + $0x180] sm:$0xff] %v2110_v25  ;;  %v2127_v13 = vadd.f32 %v359_v8, %v326_v19  ;;  %v434_v17 = vadd.f32 %v418_v42, %v1763_v30  ;;  %v419_v4 = vadd.f32 %v1778_v12, %v1624_v21  ;;  %v468_v59 = vadd.f32 %v1801_v47, %v1768_v31 }
  0x35   :  { %v498_v39 = vadd.f32 %v466_v35, %v441_v5  ;;  %v492_v41 = vadd.f32 %v1806_v48, %v1773_v32  ;;  %v556_v30 = vadd.f32 %v1401_v33, %v1978_v55  ;;  %v420_v21 = vadd.f32 %v1796_v46, %v1643_v28  ;;  %v1403_v55 = vld [vmem:[%s3026_s4 + $0x51] sm:$0xff] }
  0x36   :  { %375 = vst [vmem:[#allocation2 + $0x190] sm:$0xff] %v2127_v13  ;;  %v442_v31 = vadd.f32 %v1352_v63, %v434_v17  ;;  %v435_v12 = vadd.f32 %v419_v4, %v1791_v40  ;;  %v469_v44 = vadd.f32 %v1827_v58, %v1801_v47  ;;  %v493_v32 = vadd.f32 %v1838_v1, %v1806_v48  ;;  %v1355_v47 = vld [vmem:[%s3022_s0 + $0xe0] sm:$0xff]  ;;  %v3072_v5 = vld [vmem:[#allocation6_spill] sm:$0xff] }
  0x37   :  { %v506_v28 = vsub.f32 %v498_v39, %v490_v29  ;;  %v436_v46 = vadd.f32 %v420_v21, %v1822_v57  ;;  %v557_v49 = vadd.f32 %v1402_v6, %v1989_v22  ;;  %v421_v40 = vadd.f32 %v1833_v3, %v1662_v36  ;;  %v1404_v36 = vld [vmem:[%s3026_s4 + $0x61] sm:$0xff]  ;;  %v1357_v6 = vld [vmem:[%s3022_s0 + $0xf0] sm:$0xff] }
  0x38   :  { %v499_v38 = vadd.f32 %v467_v10, %v442_v31  ;;  %v443_v27 = vadd.f32 %v1353_v18, %v435_v12  ;;  %v470_v48 = vadd.f32 %v1860_v24, %v1827_v58  ;;  %v494_v15 = vadd.f32 %v1865_v7, %v1838_v1  ;;  %v1382_v17 = vld [vmem:[%s3025_s3 + $0x80] sm:$0xff] }
  0x39   :  { %v562_v35 = vadd.f32 %v530_v9, %v506_v28  ;;  %v444_v16 = vadd.f32 %v1354_v37, %v436_v46  ;;  %v437_v57 = vadd.f32 %v421_v40, %v1855_v23  ;;  %v2170_v22 = vadd.f32 %v1403_v55, %v2009_v54  ;;  %v1356_v23 = vld [vmem:[%s3022_s0 + $0xe8] sm:$0xff]  ;;  %v3071_v54 = vld [vmem:[#allocation7_spill] sm:$0xff]  ;;  %v2229_v28 = vld [vmem:[#allocation2 + $0x10] sm:$0xff] }
  0x3a   :  { %v507_v3 = vsub.f32 %v499_v38, %v491_v51  ;;  %v500_v8 = vadd.f32 %v468_v59, %v443_v27  ;;  %v422_v61 = vadd.f32 %v1872_v34, %v1677_v43  ;;  %v471_v58 = vadd.f32 %v1892_v53, %v1860_v24  ;;  %v1405_v24 = vld [vmem:[%s3026_s4 + $0x71] sm:$0xff]  ;;  %v3074_v39 = vld [vmem:[#allocation11_spill] sm:$0xff] }
  0x3b   :  { %v2179_v1 = vsub.f32 %v562_v35, %v554_v62  ;;  %v501_v29 = vadd.f32 %v469_v44, %v444_v16  ;;  %v445_v9 = vadd.f32 %v1355_v47, %v437_v57  ;;  %v495_v19 = vadd.f32 %v3071_v54, %v1865_v7  ;;  %v3073_v7 = vld [vmem:[#allocation10_spill] sm:$0xff]  ;;  %v1406_v12 = vld [vmem:[%s3026_s4 + $0x81] sm:$0xff]  ;;  %v2248_v16 = vld [vmem:[#allocation2 + $0x50] sm:$0xff] }
  0x3c   :  { %v563_v42 = vadd.f32 %v554_v62, %v507_v3  ;;  %v508_v33 = vsub.f32 %v500_v8, %v492_v41  ;;  %v438_v63 = vadd.f32 %v422_v61, %v3072_v5  ;;  %v2188_v43 = vadd.f32 %v1404_v36, %v2023_v0  ;;  %v3075_v41 = vld [vmem:[#allocation9_spill] sm:$0xff]  ;;  %v2221_v37 = vld [vmem:[#allocation2] sm:$0xff]  ;;  %v1358_v47 = vld [vmem:[%s3022_s0 + $0xf8] sm:$0xff] }
  0x3d   :  { %578 = vst [vmem:[#allocation2 + $0x1b0] sm:$0xff] %v2179_v1  ;;  %v509_v34 = vsub.f32 %v501_v29, %v493_v32  ;;  %v502_v10 = vadd.f32 %v470_v48, %v445_v9  ;;  %v423_v51 = vadd.f32 %v1908_v60, %v1692_v50  ;;  %v472_v62 = vadd.f32 %v3073_v7, %v1892_v53  ;;  %v1390_v50 = vld [vmem:[%s3025_s3 + $0x81] sm:$0xff]  ;;  %v2239_v48 = vld [vmem:[#allocation2 + $0x30] sm:$0xff] }
  0x3e   :  { %v2201_v0 = vsub.f32 %v563_v42, %v555_v2  ;;  %v564_v4 = vadd.f32 %v555_v2, %v508_v33  ;;  %v446_v59 = vadd.f32 %v1356_v23, %v438_v63  ;;  %v496_v18 = vadd.f32 %v3074_v39, %v3071_v54  ;;  %v1374_v2 = vld [vmem:[%s3024_s2 + $0x81] sm:$0xff]  ;;  %v2252_v36 = vld [vmem:[#allocation2 + $0x70] sm:$0xff] }
  0x3f   :  { %v565_v53 = vadd.f32 %v556_v30, %v509_v34  ;;  %v510_v60 = vsub.f32 %v502_v10, %v494_v15  ;;  %v439_v21 = vadd.f32 %v423_v51, %v3075_v41  ;;  %v2213_v31 = vadd.f32 %v1405_v24, %v2044_v56  ;;  %v2231_v46 = vld [vmem:[#allocation2 + $0x20] sm:$0xff]  ;;  %v3077_v34 = vld [vmem:[#allocation4_spill] sm:$0xff] }
  0x40   :  { %579 = vst [vmem:[#allocation2 + $0x1c0] sm:$0xff] %v2201_v0  ;;  %v2224_v44 = vsub.f32 %v564_v4, %v556_v30  ;;  %v503_v32 = vadd.f32 %v471_v58, %v446_v59  ;;  %v424_v55 = vadd.f32 %v2076_v26, %v1945_v45  ;;  %v473_v56 = vadd.f32 %v1382_v17, %v3073_v7  ;;  %v2241_v15 = vld [vmem:[#allocation2 + $0x40] sm:$0xff]  ;;  %v3078_v7 = vld [vmem:[#allocation5_spill] sm:$0xff]  ;;  %v3079_v17 = vld [vmem:[#allocation8_spill] sm:$0xff] }
  0x41   :  { %v2233_v40 = vsub.f32 %v565_v53, %v557_v49  ;;  %v566_v38 = vadd.f32 %v557_v49, %v510_v60  ;;  %v447_v27 = vadd.f32 %v1357_v6, %v439_v21  ;;  %v497_v30 = vadd.f32 %v1390_v50, %v3074_v39  ;;  %v2250_v57 = vld [vmem:[#allocation2 + $0x60] sm:$0xff]  ;;  %v3080_v59 = vld [vmem:[#allocation12_spill] sm:$0xff]  ;;  %v3081_v39 = vld [vmem:[#allocation13_spill] sm:$0xff] }
  0x42   :  { %580 = vst [vmem:[#allocation2 + $0x1d0] sm:$0xff] %v2224_v44  ;;  %v511_v45 = vsub.f32 %v503_v32, %v495_v19  ;;  %v440_v26 = vadd.f32 %v1374_v2, %v424_v55  ;;  %v2245_v35 = vadd.f32 %v1406_v12, %v2063_v11  ;;  %v594_v49 = vmul.f32 0.20417996, %v2221_v37  ;;  %v3076_v63 = vld [vmem:[#allocation3_spill] sm:$0xff]  ;;  %v3082_v50 = vld [vmem:[#allocation14_spill] sm:$0xff]  ;;  %v2310_v21 = vld [vmem:[#allocation2 + $0x90] sm:$0xff] }
  0x43   :  { %581 = vst [vmem:[#allocation2 + $0x1e0] sm:$0xff] %v2233_v40  ;;  %v2256_v3 = vsub.f32 %v566_v38, %v2170_v22  ;;  %v504_v8 = vadd.f32 %v472_v62, %v447_v27  ;;  %v595_v61 = vmul.f32 0.20417996, %v2229_v28  ;;  %v596_v58 = vmul.f32 0.20417996, %v2231_v46  ;;  %v3083_v60 = vld [vmem:[#allocation15_spill] sm:$0xff] }
  0x44   :  { %v567_v11 = vadd.f32 %v2170_v22, %v511_v45  ;;  %v448_v29 = vadd.f32 %v1358_v47, %v440_v26  ;;  %602 = vst [vmem:[%s3027_s5] sm:$0xff] %v594_v49  ;;  %v597_v9 = vmul.f32 0.20417996, %v2239_v48  ;;  %v598_v23 = vmul.f32 0.20417996, %v2241_v15  ;;  %v3084_v12 = vld [vmem:[#allocation16_spill] sm:$0xff]  ;;  %v3085_v55 = vld [vmem:[#allocation17_spill] sm:$0xff] }
  0x45   :  { %582 = vst [vmem:[#allocation2 + $0x1f0] sm:$0xff] %v2256_v3  ;;  %v512_v54 = vsub.f32 %v504_v8, %v496_v18  ;;  %603 = vst [vmem:[%s3027_s5 + $0x8] sm:$0xff] %v595_v61  ;;  %v599_v22 = vmul.f32 0.20417996, %v2248_v16  ;;  %v600_v19 = vmul.f32 0.20417996, %v2250_v57 }
  0x46   :  { %604 = vst [vmem:[%s3027_s5 + $0x10] sm:$0xff] %v596_v58  ;;  %v601_v42 = vmul.f32 0.20417996, %v2252_v36  ;;  %v2277_v33 = vsub.f32 %v567_v11, %v2188_v43  ;;  %v505_v5 = vadd.f32 %v473_v56, %v448_v29  ;;  %605 = vst [vmem:[%s3027_s5 + $0x18] sm:$0xff] %v597_v9  ;;  %v773_v24 = vmul.f32 0.20417996, %v3076_v63 }
  0x47   :  { %606 = vst [vmem:[%s3027_s5 + $0x20] sm:$0xff] %v598_v23  ;;  %v774_v10 = vmul.f32 0.20417996, %v3077_v34  ;;  %v568_v51 = vadd.f32 %v2188_v43, %v512_v54  ;;  %607 = vst [vmem:[%s3027_s5 + $0x28] sm:$0xff] %v599_v22  ;;  %v775_v62 = vmul.f32 0.20417996, %v3078_v7  ;;  %v2357_v58 = vadd.f32 %v2310_v21, %v2221_v37 }
  0x48   :  { %608 = vst [vmem:[%s3027_s5 + $0x30] sm:$0xff] %v600_v19  ;;  %609 = vst [vmem:[%s3027_s5 + $0x38] sm:$0xff] %v601_v42  ;;  %v776_v4 = vmul.f32 0.20417996, %v3079_v17  ;;  %v777_v6 = vmul.f32 0.20417996, %v3080_v59  ;;  %v513_v43 = vsub.f32 %v505_v5, %v497_v30 }
  0x49   :  { %583 = vst [vmem:[#allocation2 + $0x200] sm:$0xff] %v2277_v33  ;;  %1431 = vst [vmem:[%s3027_s5 + $0x80] sm:$0xff] %v773_v24  ;;  %v778_v18 = vmul.f32 0.20417996, %v3081_v39  ;;  %v779_v53 = vmul.f32 0.20417996, %v3082_v50  ;;  %v2313_v2 = vsub.f32 %v568_v51, %v2213_v31  ;;  %v667_v50 = vadd.f32 %v2221_v37, %v3084_v12 }
  0x4a   :  { %1432 = vst [vmem:[%s3027_s5 + $0x88] sm:$0xff] %v774_v10  ;;  %v780_v41 = vmul.f32 0.20417996, %v3083_v60  ;;  %1433 = vst [vmem:[%s3027_s5 + $0x90] sm:$0xff] %v775_v62  ;;  %v953_v32 = vmul.f32 0.20417996, %v3084_v12  ;;  %v569_v47 = vadd.f32 %v2213_v31, %v513_v43 }
  0x4b   :  { %1434 = vst [vmem:[%s3027_s5 + $0x98] sm:$0xff] %v776_v4  ;;  %1435 = vst [vmem:[%s3027_s5 + $0xa0] sm:$0xff] %v777_v6  ;;  %v954_v56 = vmul.f32 0.20417996, %v3085_v55  ;;  %v3086_v38 = vld [vmem:[#allocation18_spill] sm:$0xff]  ;;  %v2340_v49 = vld [vmem:[#allocation2 + $0xa0] sm:$0xff] }
  0x4c   :  { %v955_v27 = vmul.f32 0.20417996, %v3086_v38  ;;  %1436 = vst [vmem:[%s3027_s5 + $0xa8] sm:$0xff] %v778_v18  ;;  %1437 = vst [vmem:[%s3027_s5 + $0xb0] sm:$0xff] %v779_v53  ;;  %v956_v30 = vmul.f32 0.20417996, %v2066_v20  ;;  %v2364_v9 = vsub.f32 %v569_v47, %v2245_v35  ;;  %v627_v63 = vadd.f32 %v2340_v49, %v2229_v28 }
  0x4d   :  { %1438 = vst [vmem:[%s3027_s5 + $0xb8] sm:$0xff] %v780_v41  ;;  %v957_v45 = vmul.f32 0.20417996, %v2085_v52  ;;  %v958_v26 = vmul.f32 0.20417996, %v2094_v14  ;;  %584 = vst [vmem:[#allocation2 + $0x210] sm:$0xff] %v2313_v2  ;;  %v633_v18 = vadd.f32 %v2252_v36, %v3083_v60  ;;  %v670_v47 = vadd.f32 %v2239_v48, %v2066_v20 }
  0x4e   :  { %1463 = vst [vmem:[%s3027_s5 + $0x200] sm:$0xff] %v953_v32  ;;  %1464 = vst [vmem:[%s3027_s5 + $0x208] sm:$0xff] %v954_v56  ;;  %v959_v31 = vmul.f32 0.20417996, %v2110_v25  ;;  %v960_v8 = vmul.f32 0.20417996, %v2127_v13  ;;  %v668_v56 = vadd.f32 %v2229_v28, %v3085_v55 }
  0x4f   :  { %1465 = vst [vmem:[%s3027_s5 + $0x210] sm:$0xff] %v955_v27  ;;  %v1135_v61 = vmul.f32 0.20417996, %v2179_v1  ;;  %v2359_v11 = vld [vmem:[#allocation2 + $0xb0] sm:$0xff]  ;;  %v2361_v29 = vld [vmem:[#allocation2 + $0xc0] sm:$0xff]  ;;  %1466 = vst [vmem:[%s3027_s5 + $0x218] sm:$0xff] %v956_v30  ;;  %v669_v27 = vadd.f32 %v2231_v46, %v3086_v38 }
  0x50   :  { %1467 = vst [vmem:[%s3027_s5 + $0x220] sm:$0xff] %v957_v45  ;;  %1468 = vst [vmem:[%s3027_s5 + $0x228] sm:$0xff] %v958_v26  ;;  %v1136_v23 = vmul.f32 0.20417996, %v2201_v0  ;;  %v1137_v54 = vmul.f32 0.20417996, %v2224_v44  ;;  %v628_v10 = vadd.f32 %v2359_v11, %v2231_v46  ;;  %v629_v51 = vadd.f32 %v2361_v29, %v2239_v48 }
  0x51   :  { %v1138_v22 = vmul.f32 0.20417996, %v2233_v40  ;;  %v2378_v35 = vld [vmem:[#allocation2 + $0xd0] sm:$0xff]  ;;  %1469 = vst [vmem:[%s3027_s5 + $0x230] sm:$0xff] %v959_v31  ;;  %1470 = vst [vmem:[%s3027_s5 + $0x238] sm:$0xff] %v960_v8  ;;  %v2410_v7 = vld [vmem:[#allocation2 + $0xe0] sm:$0xff]  ;;  %v671_v45 = vadd.f32 %v2241_v15, %v2085_v52  ;;  %v672_v26 = vadd.f32 %v2248_v16, %v2094_v14  ;;  %v673_v31 = vadd.f32 %v2250_v57, %v2110_v25 }
  0x52   :  { %1495 = vst [vmem:[%s3027_s5 + $0x280] sm:$0xff] %v1135_v61  ;;  %v1139_v19 = vmul.f32 0.20417996, %v2256_v3  ;;  %v1140_v42 = vmul.f32 0.20417996, %v2277_v33  ;;  %585 = vst [vmem:[#allocation2 + $0x220] sm:$0xff] %v2364_v9  ;;  %v630_v4 = vadd.f32 %v2378_v35, %v2241_v15  ;;  %v631_v59 = vadd.f32 %v2410_v7, %v2248_v16 }
  0x53   :  { %v1141_v5 = vmul.f32 0.20417996, %v2313_v2  ;;  %1496 = vst [vmem:[%s3027_s5 + $0x288] sm:$0xff] %v1136_v23  ;;  %1497 = vst [vmem:[%s3027_s5 + $0x290] sm:$0xff] %v1137_v54  ;;  %v1142_v24 = vmul.f32 0.20417996, %v2364_v9  ;;  %v674_v23 = vadd.f32 %v2252_v36, %v2127_v13  ;;  %v724_v54 = vadd.f32 %v2357_v58, %v3084_v12 }
  0x54   :  { %1498 = vst [vmem:[%s3027_s5 + $0x298] sm:$0xff] %v1138_v22  ;;  %v634_v34 = vmul.f32 0.123841405, %v2357_v58  ;;  %v2412_v62 = vld [vmem:[#allocation2 + $0xf0] sm:$0xff]  ;;  %1499 = vst [vmem:[%s3027_s5 + $0x2a0] sm:$0xff] %v1139_v19  ;;  %v726_v58 = vadd.f32 %v628_v10, %v3086_v38  ;;  %v729_v38 = vadd.f32 %v631_v59, %v2094_v14  ;;  %v2516_v14 = vld [vmem:[#allocation2 + $0x21] sm:$0xff] }
  0x55   :  { %1500 = vst [vmem:[%s3027_s5 + $0x2a8] sm:$0xff] %v1140_v42  ;;  %1501 = vst [vmem:[%s3027_s5 + $0x2b0] sm:$0xff] %v1141_v5  ;;  %v635_v17 = vmul.f32 0.123841405, %v627_v63  ;;  %v632_v6 = vadd.f32 %v2412_v62, %v2250_v57  ;;  %v636_v43 = vmul.f32 0.123841405, %v628_v10  ;;  %v725_v5 = vadd.f32 %v627_v63, %v3085_v55 }
  0x56   :  { %1502 = vst [vmem:[%s3027_s5 + $0x2b8] sm:$0xff] %v1142_v24  ;;  %1407 = vst [vmem:[%s3027_s5 + $0x40] sm:$0xff] %v634_v34  ;;  %v637_v39 = vmul.f32 0.123841405, %v629_v51  ;;  %v638_v53 = vmul.f32 0.123841405, %v630_v4  ;;  %v740_v12 = vadd.f32 %v724_v54, %v2179_v1  ;;  %v727_v34 = vadd.f32 %v629_v51, %v2066_v20 }
  0x57   :  { %1408 = vst [vmem:[%s3027_s5 + $0x48] sm:$0xff] %v635_v17  ;;  %v639_v41 = vmul.f32 0.123841405, %v631_v59  ;;  %v640_v32 = vmul.f32 0.123841405, %v632_v6  ;;  %1409 = vst [vmem:[%s3027_s5 + $0x50] sm:$0xff] %v636_v43  ;;  %v741_v55 = vadd.f32 %v725_v5, %v2201_v0  ;;  %v728_v63 = vadd.f32 %v630_v4, %v2085_v52 }
  0x58   :  { %1410 = vst [vmem:[%s3027_s5 + $0x58] sm:$0xff] %v637_v39  ;;  %v641_v60 = vmul.f32 0.123841405, %v633_v18  ;;  %v675_v37 = vmul.f32 0.123841405, %v667_v50  ;;  %1411 = vst [vmem:[%s3027_s5 + $0x60] sm:$0xff] %v638_v53  ;;  %v730_v20 = vadd.f32 %v632_v6, %v2110_v25  ;;  %v742_v43 = vadd.f32 %v726_v58, %v2224_v44 }
  0x59   :  { %1412 = vst [vmem:[%s3027_s5 + $0x68] sm:$0xff] %v639_v41  ;;  %1413 = vst [vmem:[%s3027_s5 + $0x70] sm:$0xff] %v640_v32  ;;  %v676_v30 = vmul.f32 0.123841405, %v668_v56  ;;  %v677_v8 = vmul.f32 0.123841405, %v669_v27  ;;  %v743_v39 = vadd.f32 %v727_v34, %v2233_v40  ;;  %v744_v4 = vadd.f32 %v728_v63, %v2256_v3 }
  0x5a   :  { %1414 = vst [vmem:[%s3027_s5 + $0x78] sm:$0xff] %v641_v60  ;;  %1415 = vst [vmem:[%s3027_s5 + $0x100] sm:$0xff] %v675_v37  ;;  %v678_v61 = vmul.f32 0.123841405, %v670_v47  ;;  %v679_v22 = vmul.f32 0.123841405, %v671_v45  ;;  %v745_v59 = vadd.f32 %v729_v38, %v2277_v33  ;;  %v746_v6 = vadd.f32 %v730_v20, %v2313_v2 }
  0x5b   :  { %1416 = vst [vmem:[%s3027_s5 + $0x108] sm:$0xff] %v676_v30  ;;  %v680_v19 = vmul.f32 0.123841405, %v672_v26  ;;  %v681_v42 = vmul.f32 0.123841405, %v673_v31  ;;  %1417 = vst [vmem:[%s3027_s5 + $0x110] sm:$0xff] %v677_v8  ;;  %v847_v20 = vadd.f32 %v2310_v21, %v2179_v1  ;;  %v848_v1 = vadd.f32 %v2340_v49, %v2201_v0 }
  0x5c   :  { %1418 = vst [vmem:[%s3027_s5 + $0x118] sm:$0xff] %v678_v61  ;;  %v682_v24 = vmul.f32 0.123841405, %v674_v23  ;;  %1419 = vst [vmem:[%s3027_s5 + $0x120] sm:$0xff] %v679_v22  ;;  %v2505_v10 = vld [vmem:[#allocation2 + $0x100] sm:$0xff]  ;;  %v2514_v52 = vld [vmem:[#allocation2 + $0x11] sm:$0xff]  ;;  %v2555_v61 = vadd.f32 %v2516_v14, %v2359_v11 }
  0x5d   :  { %1420 = vst [vmem:[%s3027_s5 + $0x128] sm:$0xff] %v680_v19  ;;  %1421 = vst [vmem:[%s3027_s5 + $0x130] sm:$0xff] %v681_v42  ;;  %v798_v51 = vld [vmem:[#allocation2 + $0x1] sm:$0xff]  ;;  %v748_v17 = vmul.f32 0.07511361, %v740_v12  ;;  %v715_v18 = vadd.f32 %v2505_v10, %v2252_v36  ;;  %v2521_v50 = vld [vmem:[#allocation2 + $0x31] sm:$0xff]  ;;  %v2543_v31 = vadd.f32 %v2514_v52, %v2340_v49 }
  0x5e   :  { %1422 = vst [vmem:[%s3027_s5 + $0x138] sm:$0xff] %v682_v24  ;;  %v749_v25 = vmul.f32 0.07511361, %v741_v55  ;;  %v2523_v53 = vld [vmem:[#allocation2 + $0x41] sm:$0xff]  ;;  %v2525_v41 = vld [vmem:[#allocation2 + $0x51] sm:$0xff]  ;;  %v2532_v37 = vadd.f32 %v798_v51, %v2310_v21  ;;  %v2559_v23 = vadd.f32 %v2521_v50, %v2361_v29  ;;  %v849_v21 = vadd.f32 %v2359_v11, %v2224_v44 }
  0x5f   :  { %3087 = vst [vmem:[#allocation7_spill] sm:$0xff] %v2523_v53  ;;  %3088 = vst [vmem:[#allocation6_spill] sm:$0xff] %v2525_v41  ;;  %v750_v32 = vmul.f32 0.07511361, %v742_v43  ;;  %v751_v56 = vmul.f32 0.07511361, %v743_v39  ;;  %v731_v60 = vadd.f32 %v715_v18, %v2127_v13  ;;  %v2573_v22 = vadd.f32 %v2523_v53, %v2378_v35 }
  0x60   :  { %1423 = vst [vmem:[%s3027_s5 + $0x140] sm:$0xff] %v748_v17  ;;  %v2534_v27 = vld [vmem:[#allocation2 + $0x61] sm:$0xff]  ;;  %v2536_v47 = vld [vmem:[#allocation2 + $0x71] sm:$0xff]  ;;  %1424 = vst [vmem:[%s3027_s5 + $0x148] sm:$0xff] %v749_v25  ;;  %v752_v30 = vmul.f32 0.07511361, %v744_v4  ;;  %v2577_v19 = vadd.f32 %v2525_v41, %v2410_v7  ;;  %v850_v39 = vadd.f32 %v2361_v29, %v2233_v40 }
  0x61   :  { %3089 = vst [vmem:[#allocation10_spill] sm:$0xff] %v2534_v27  ;;  %3090 = vst [vmem:[#allocation11_spill] sm:$0xff] %v2536_v47  ;;  %v753_v45 = vmul.f32 0.07511361, %v745_v59  ;;  %v754_v26 = vmul.f32 0.07511361, %v746_v6  ;;  %v747_v13 = vadd.f32 %v731_v60, %v2364_v9  ;;  %v2581_v42 = vadd.f32 %v2534_v27, %v2412_v62 }
  0x62   :  { %1425 = vst [vmem:[%s3027_s5 + $0x150] sm:$0xff] %v750_v32  ;;  %1426 = vst [vmem:[%s3027_s5 + $0x158] sm:$0xff] %v751_v56  ;;  %v814_v8 = vmul.f32 0.123841405, %v2532_v37  ;;  %v815_v54 = vmul.f32 0.123841405, %v2543_v31  ;;  %v2590_v58 = vadd.f32 %v2536_v47, %v2505_v10  ;;  %v851_v6 = vadd.f32 %v2378_v35, %v2256_v3 }
  0x63   :  { %1427 = vst [vmem:[%s3027_s5 + $0x160] sm:$0xff] %v752_v30  ;;  %1428 = vst [vmem:[%s3027_s5 + $0x168] sm:$0xff] %v753_v45  ;;  %v755_v5 = vmul.f32 0.07511361, %v747_v13  ;;  %v816_v24 = vmul.f32 0.123841405, %v2555_v61  ;;  %v852_v32 = vadd.f32 %v2410_v7, %v2277_v33  ;;  %v853_v56 = vadd.f32 %v2412_v62, %v2313_v2 }
  0x64   :  { %1429 = vst [vmem:[%s3027_s5 + $0x170] sm:$0xff] %v754_v26  ;;  %1439 = vst [vmem:[%s3027_s5 + $0xc0] sm:$0xff] %v814_v8  ;;  %v817_v12 = vmul.f32 0.123841405, %v2559_v23  ;;  %v970_v34 = vld [vmem:[#allocation2 + $0x120] sm:$0xff]  ;;  %v2600_v51 = vld [vmem:[#allocation2 + $0x130] sm:$0xff] }
  0x65   :  { %1440 = vst [vmem:[%s3027_s5 + $0xc8] sm:$0xff] %v815_v54  ;;  %v818_v55 = vmul.f32 0.123841405, %v2573_v22  ;;  %v819_v63 = vmul.f32 0.123841405, %v2577_v19  ;;  %v2602_v17 = vld [vmem:[#allocation2 + $0x140] sm:$0xff]  ;;  %v854_v54 = vadd.f32 %v2505_v10, %v2364_v9 }
  0x66   :  { %v820_v38 = vmul.f32 0.123841405, %v2581_v42  ;;  %1430 = vst [vmem:[%s3027_s5 + $0x178] sm:$0xff] %v755_v5  ;;  %1441 = vst [vmem:[%s3027_s5 + $0xd0] sm:$0xff] %v816_v24  ;;  %v821_v43 = vmul.f32 0.123841405, %v2590_v58 }
  0x67   :  { %1442 = vst [vmem:[%s3027_s5 + $0xd8] sm:$0xff] %v817_v12  ;;  %v2620_v18 = vld [vmem:[#allocation2 + $0x1b0] sm:$0xff]  ;;  %v2624_v4 = vld [vmem:[#allocation2 + $0x160] sm:$0xff]  ;;  %1443 = vst [vmem:[%s3027_s5 + $0xe0] sm:$0xff] %v818_v55  ;;  %v855_v59 = vmul.f32 0.123841405, %v847_v20  ;;  %v988_v20 = vadd.f32 %v2602_v17, %v2224_v44 }
  0x68   :  { %v2622_v25 = vld [vmem:[#allocation2 + $0x150] sm:$0xff]  ;;  %1444 = vst [vmem:[%s3027_s5 + $0xe8] sm:$0xff] %v819_v63  ;;  %1445 = vst [vmem:[%s3027_s5 + $0xf0] sm:$0xff] %v820_v38  ;;  %v2643_v30 = vld [vmem:[#allocation2 + $0x180] sm:$0xff]  ;;  %v856_v26 = vmul.f32 0.123841405, %v848_v1  ;;  %v2656_v55 = vadd.f32 %v2620_v18, %v970_v34  ;;  %v987_v38 = vadd.f32 %v2600_v51, %v2201_v0  ;;  %v990_v44 = vadd.f32 %v2624_v4, %v2256_v3 }
  0x69   :  { %v2641_v60 = vld [vmem:[#allocation2 + $0x170] sm:$0xff]  ;;  %1446 = vst [vmem:[%s3027_s5 + $0xf8] sm:$0xff] %v821_v43  ;;  %v857_v13 = vmul.f32 0.123841405, %v849_v21  ;;  %v858_v8 = vmul.f32 0.123841405, %v850_v39  ;;  %v989_v43 = vadd.f32 %v2622_v25, %v2233_v40  ;;  %v992_v1 = vadd.f32 %v2643_v30, %v2313_v2 }
  0x6a   :  { %v2645_v45 = vld [vmem:[#allocation2 + $0x190] sm:$0xff]  ;;  %1447 = vst [vmem:[%s3027_s5 + $0x180] sm:$0xff] %v855_v59  ;;  %v859_v5 = vmul.f32 0.123841405, %v851_v6  ;;  %v860_v24 = vmul.f32 0.123841405, %v852_v32  ;;  %v991_v40 = vadd.f32 %v2641_v60, %v2277_v33  ;;  %v904_v53 = vadd.f32 %v2620_v18, %v2532_v37 }
  0x6b   :  { %v861_v12 = vmul.f32 0.123841405, %v853_v56  ;;  %1448 = vst [vmem:[%s3027_s5 + $0x188] sm:$0xff] %v856_v26  ;;  %1449 = vst [vmem:[%s3027_s5 + $0x190] sm:$0xff] %v857_v13  ;;  %v862_v63 = vmul.f32 0.123841405, %v854_v54  ;;  %v993_v6 = vadd.f32 %v2645_v45, %v2364_v9 }
  0x6c   :  { %1450 = vst [vmem:[%s3027_s5 + $0x198] sm:$0xff] %v858_v8  ;;  %1451 = vst [vmem:[%s3027_s5 + $0x1a0] sm:$0xff] %v859_v5  ;;  %v994_v0 = vmul.f32 0.123841405, %v2656_v55  ;;  %v995_v21 = vmul.f32 0.123841405, %v987_v38  ;;  %v1028_v8 = vadd.f32 %v970_v34, %v2229_v28  ;;  %v1029_v28 = vadd.f32 %v2600_v51, %v2231_v46 }
  0x6d   :  { %1452 = vst [vmem:[%s3027_s5 + $0x1a8] sm:$0xff] %v860_v24  ;;  %1453 = vst [vmem:[%s3027_s5 + $0x1b0] sm:$0xff] %v861_v12  ;;  %v996_v39 = vmul.f32 0.123841405, %v988_v20  ;;  %v997_v59 = vmul.f32 0.123841405, %v989_v43  ;;  %v1030_v34 = vadd.f32 %v2602_v17, %v2239_v48  ;;  %v1032_v48 = vadd.f32 %v2624_v4, %v2248_v16 }
  0x6e   :  { %1454 = vst [vmem:[%s3027_s5 + $0x1b8] sm:$0xff] %v862_v63  ;;  %v2694_v32 = vld [vmem:[#allocation2 + $0x121] sm:$0xff]  ;;  %1471 = vst [vmem:[%s3027_s5 + $0x240] sm:$0xff] %v994_v0  ;;  %v998_v56 = vmul.f32 0.123841405, %v990_v44  ;;  %v2700_v54 = vld [vmem:[#allocation2 + $0x131] sm:$0xff]  ;;  %v1031_v63 = vadd.f32 %v2622_v25, %v2241_v15  ;;  %v1033_v15 = vadd.f32 %v2641_v60, %v2250_v57  ;;  %v1034_v0 = vadd.f32 %v2643_v30, %v2252_v36 }
  0x6f   :  { %v999_v26 = vmul.f32 0.123841405, %v991_v40  ;;  %v1000_v13 = vmul.f32 0.123841405, %v992_v1  ;;  %v2702_v5 = vld [vmem:[#allocation2 + $0x141] sm:$0xff]  ;;  %v2704_v24 = vld [vmem:[#allocation2 + $0x151] sm:$0xff] }
  0x70   :  { %1472 = vst [vmem:[%s3027_s5 + $0x248] sm:$0xff] %v995_v21  ;;  %1473 = vst [vmem:[%s3027_s5 + $0x250] sm:$0xff] %v996_v39  ;;  %v1001_v12 = vmul.f32 0.123841405, %v993_v6  ;;  %v2721_v38 = vld [vmem:[#allocation2 + $0x161] sm:$0xff]  ;;  %v2723_v20 = vld [vmem:[#allocation2 + $0x171] sm:$0xff] }
  0x71   :  { %1474 = vst [vmem:[%s3027_s5 + $0x258] sm:$0xff] %v997_v59  ;;  %v2725_v43 = vld [vmem:[#allocation2 + $0x181] sm:$0xff]  ;;  %1475 = vst [vmem:[%s3027_s5 + $0x260] sm:$0xff] %v998_v56  ;;  %v1036_v46 = vmul.f32 0.123841405, %v1028_v8  ;;  %v2744_v40 = vld [vmem:[#allocation2 + $0x1d0] sm:$0xff] }
  0x72   :  { %1476 = vst [vmem:[%s3027_s5 + $0x268] sm:$0xff] %v999_v26  ;;  %1477 = vst [vmem:[%s3027_s5 + $0x270] sm:$0xff] %v1000_v13  ;;  %v2742_v44 = vld [vmem:[#allocation2 + $0x1c0] sm:$0xff]  ;;  %v2748_v21 = vld [vmem:[#allocation2 + $0x191] sm:$0xff]  ;;  %v1037_v39 = vmul.f32 0.123841405, %v1029_v28  ;;  %v2762_v13 = vadd.f32 %v2694_v32, %v2620_v18  ;;  %v2779_v28 = vadd.f32 %v2702_v5, %v2744_v40 }
  0x73   :  { %v2746_v1 = vld [vmem:[#allocation2 + $0x1e0] sm:$0xff]  ;;  %1478 = vst [vmem:[%s3027_s5 + $0x278] sm:$0xff] %v1001_v12  ;;  %v1038_v16 = vmul.f32 0.123841405, %v1030_v34  ;;  %v1039_v59 = vmul.f32 0.123841405, %v1031_v63  ;;  %v2775_v12 = vadd.f32 %v2700_v54, %v2742_v44 }
  0x74   :  { %v2753_v6 = vld [vmem:[#allocation2 + $0x80] sm:$0xff]  ;;  %1479 = vst [vmem:[%s3027_s5 + $0x300] sm:$0xff] %v1036_v46  ;;  %v1040_v36 = vmul.f32 0.123841405, %v1032_v48  ;;  %v1041_v56 = vmul.f32 0.123841405, %v1033_v15  ;;  %v2783_v34 = vadd.f32 %v2704_v24, %v2746_v1  ;;  %v1172_v46 = vadd.f32 %v2721_v38, %v2256_v3 }
  0x75   :  { %v1035_v57 = vadd.f32 %v2753_v6, %v2645_v45  ;;  %v1042_v26 = vmul.f32 0.123841405, %v1034_v0  ;;  %1480 = vst [vmem:[%s3027_s5 + $0x308] sm:$0xff] %v1037_v39  ;;  %1481 = vst [vmem:[%s3027_s5 + $0x310] sm:$0xff] %v1038_v16  ;;  %v1176_v63 = vmul.f32 0.123841405, %v2762_v13  ;;  %v1173_v48 = vadd.f32 %v2723_v20, %v2277_v33 }
  0x76   :  { %1482 = vst [vmem:[%s3027_s5 + $0x318] sm:$0xff] %v1039_v59  ;;  %1483 = vst [vmem:[%s3027_s5 + $0x320] sm:$0xff] %v1040_v36  ;;  %v1174_v15 = vadd.f32 %v2725_v43, %v2313_v2  ;;  %v2801_v0 = vld [vmem:[#allocation2 + $0x1f0] sm:$0xff]  ;;  %v2803_v39 = vld [vmem:[#allocation2 + $0x200] sm:$0xff]  ;;  %v1177_v16 = vmul.f32 0.123841405, %v2775_v12  ;;  %v1175_v33 = vadd.f32 %v2748_v21, %v2364_v9  ;;  %v1216_v47 = vadd.f32 %v2753_v6, %v2364_v9 }
  0x77   :  { %v1043_v8 = vmul.f32 0.123841405, %v1035_v57  ;;  %1484 = vst [vmem:[%s3027_s5 + $0x328] sm:$0xff] %v1041_v56  ;;  %1485 = vst [vmem:[%s3027_s5 + $0x330] sm:$0xff] %v1042_v26  ;;  %v1178_v59 = vmul.f32 0.123841405, %v2779_v28  ;;  %v1209_v26 = vadd.f32 %v2620_v18, %v2340_v49  ;;  %v907_v37 = vadd.f32 %v2746_v1, %v2559_v23 }
  0x78   :  { %v1179_v3 = vmul.f32 0.123841405, %v2783_v34  ;;  %1503 = vst [vmem:[%s3027_s5 + $0x2c0] sm:$0xff] %v1176_v63  ;;  %v1180_v57 = vmul.f32 0.123841405, %v1172_v46  ;;  %1504 = vst [vmem:[%s3027_s5 + $0x2c8] sm:$0xff] %v1177_v16  ;;  %v1210_v63 = vadd.f32 %v2742_v44, %v2359_v11  ;;  %v1211_v46 = vadd.f32 %v2744_v40, %v2361_v29 }
  0x79   :  { %1486 = vst [vmem:[%s3027_s5 + $0x338] sm:$0xff] %v1043_v8  ;;  %v1181_v36 = vmul.f32 0.123841405, %v1173_v48  ;;  %v1182_v56 = vmul.f32 0.123841405, %v1174_v15  ;;  %1505 = vst [vmem:[%s3027_s5 + $0x2d0] sm:$0xff] %v1178_v59  ;;  %v1212_v48 = vadd.f32 %v2746_v1, %v2378_v35  ;;  %v1213_v16 = vadd.f32 %v2801_v0, %v2410_v7 }
  0x7a   :  { %1506 = vst [vmem:[%s3027_s5 + $0x2d8] sm:$0xff] %v1179_v3  ;;  %v1183_v8 = vmul.f32 0.123841405, %v1175_v33  ;;  %1507 = vst [vmem:[%s3027_s5 + $0x2e0] sm:$0xff] %v1180_v57  ;;  %v1217_v15 = vmul.f32 0.123841405, %v1209_v26  ;;  %v1214_v59 = vadd.f32 %v2803_v39, %v2412_v62  ;;  %v1215_v3 = vadd.f32 %v2505_v10, %v2313_v2 }
  0x7b   :  { %1508 = vst [vmem:[%s3027_s5 + $0x2e8] sm:$0xff] %v1181_v36  ;;  %1509 = vst [vmem:[%s3027_s5 + $0x2f0] sm:$0xff] %v1182_v56  ;;  %v2848_v33 = vld [vmem:[#allocation2 + $0x210] sm:$0xff]  ;;  %v2850_v57 = vld [vmem:[#allocation2 + $0x220] sm:$0xff]  ;;  %v1218_v36 = vmul.f32 0.123841405, %v1210_v63  ;;  %v906_v63 = vadd.f32 %v2744_v40, %v2555_v61  ;;  %v909_v61 = vadd.f32 %v2803_v39, %v2577_v19 }
  0x7c   :  { %1510 = vst [vmem:[%s3027_s5 + $0x2f8] sm:$0xff] %v1183_v8  ;;  %v1219_v56 = vmul.f32 0.123841405, %v1211_v46  ;;  %v1220_v26 = vmul.f32 0.123841405, %v1212_v48  ;;  %1511 = vst [vmem:[%s3027_s5 + $0x380] sm:$0xff] %v1217_v15  ;;  %v905_v8 = vadd.f32 %v2742_v44, %v2543_v31  ;;  %v908_v31 = vadd.f32 %v2801_v0, %v2573_v22 }
  0x7d   :  { %v1221_v27 = vmul.f32 0.123841405, %v1213_v16  ;;  %v1222_v2 = vmul.f32 0.123841405, %v1214_v59  ;;  %v1223_v41 = vmul.f32 0.123841405, %v1215_v3  ;;  %v910_v23 = vadd.f32 %v2848_v33, %v2581_v42 }
  0x7e   :  { %1512 = vst [vmem:[%s3027_s5 + $0x388] sm:$0xff] %v1218_v36  ;;  %1513 = vst [vmem:[%s3027_s5 + $0x390] sm:$0xff] %v1219_v56  ;;  %v1224_v9 = vmul.f32 0.123841405, %v1216_v47  ;;  %v920_v47 = vadd.f32 %v2694_v32, %v904_v53  ;;  %v922_v18 = vadd.f32 %v2702_v5, %v906_v63  ;;  %v911_v53 = vadd.f32 %v2850_v57, %v2590_v58  ;;  %v1077_v46 = vld [vmem:[#allocation2 + $0x10] sm:$0xff]  ;;  %v1082_v63 = vld [vmem:[#allocation2 + $0x60] sm:$0xff] }
  0x7f   :  { %1514 = vst [vmem:[%s3027_s5 + $0x398] sm:$0xff] %v1220_v26  ;;  %1515 = vst [vmem:[%s3027_s5 + $0x3a0] sm:$0xff] %v1221_v27  ;;  %v921_v27 = vadd.f32 %v2700_v54, %v905_v8  ;;  %v924_v32 = vadd.f32 %v2721_v38, %v908_v31  ;;  %v925_v19 = vadd.f32 %v2723_v20, %v909_v61  ;;  %v1079_v26 = vld [vmem:[#allocation2 + $0x30] sm:$0xff] }
  0x80   :  { %1516 = vst [vmem:[%s3027_s5 + $0x3a8] sm:$0xff] %v1222_v2  ;;  %1517 = vst [vmem:[%s3027_s5 + $0x3b0] sm:$0xff] %v1223_v41  ;;  %v923_v41 = vadd.f32 %v2704_v24, %v907_v37  ;;  %v928_v22 = vmul.f32 0.07511361, %v920_v47  ;;  %v926_v42 = vadd.f32 %v2725_v43, %v910_v23  ;;  %v930_v15 = vmul.f32 0.07511361, %v922_v18 }
  0x81   :  { %1518 = vst [vmem:[%s3027_s5 + $0x3b8] sm:$0xff] %v1224_v9  ;;  %v929_v48 = vmul.f32 0.07511361, %v921_v27  ;;  %v927_v54 = vadd.f32 %v2748_v21, %v911_v53  ;;  %v932_v5 = vmul.f32 0.07511361, %v924_v32  ;;  %v1085_v59 = vadd.f32 %v1077_v46, %v2656_v55  ;;  %v1083_v37 = vld [vmem:[#allocation2 + $0x70] sm:$0xff] }
  0x82   :  { %v931_v16 = vmul.f32 0.07511361, %v923_v41  ;;  %1455 = vst [vmem:[%s3027_s5 + $0x1c0] sm:$0xff] %v928_v22  ;;  %v933_v24 = vmul.f32 0.07511361, %v925_v19  ;;  %1457 = vst [vmem:[%s3027_s5 + $0x1d0] sm:$0xff] %v930_v15  ;;  %v1070_v36 = vadd.f32 %v2742_v44, %v2600_v51  ;;  %v1071_v56 = vadd.f32 %v2744_v40, %v2602_v17 }
  0x83   :  { %v934_v58 = vmul.f32 0.07511361, %v926_v42  ;;  %1456 = vst [vmem:[%s3027_s5 + $0x1c8] sm:$0xff] %v929_v48  ;;  %v935_v3 = vmul.f32 0.07511361, %v927_v54  ;;  %v1072_v55 = vadd.f32 %v2746_v1, %v2622_v25  ;;  %1459 = vst [vmem:[%s3027_s5 + $0x1e0] sm:$0xff] %v932_v5  ;;  %v1102_v51 = vadd.f32 %v1085_v59, %v2340_v49 }
  0x84   :  { %1458 = vst [vmem:[%s3027_s5 + $0x1d8] sm:$0xff] %v931_v16  ;;  %1460 = vst [vmem:[%s3027_s5 + $0x1e8] sm:$0xff] %v933_v24  ;;  %v1078_v44 = vld [vmem:[#allocation2 + $0x20] sm:$0xff]  ;;  %v1073_v25 = vadd.f32 %v2801_v0, %v2624_v4  ;;  %v1074_v40 = vadd.f32 %v2803_v39, %v2641_v60  ;;  %v1075_v1 = vadd.f32 %v2643_v30, %v2848_v33  ;;  %v1081_v49 = vld [vmem:[#allocation2 + $0x50] sm:$0xff] }
  0x85   :  { %1461 = vst [vmem:[%s3027_s5 + $0x1f0] sm:$0xff] %v934_v58  ;;  %v1080_v17 = vld [vmem:[#allocation2 + $0x40] sm:$0xff]  ;;  %1462 = vst [vmem:[%s3027_s5 + $0x1f8] sm:$0xff] %v935_v3  ;;  %v1086_v2 = vadd.f32 %v1078_v44, %v1070_v36  ;;  %v1087_v9 = vadd.f32 %v1079_v26, %v1071_v56  ;;  %v1076_v47 = vadd.f32 %v2645_v45, %v2850_v57  ;;  %v1110_v4 = vmul.f32 0.07511361, %v1102_v51  ;;  %v3092_v44 = vld [vmem:[#allocation6_spill] sm:$0xff] }
  0x86   :  { %v1088_v8 = vadd.f32 %v1080_v17, %v1072_v55  ;;  %v1089_v31 = vadd.f32 %v1081_v49, %v1073_v25  ;;  %v1090_v61 = vadd.f32 %v1082_v63, %v1074_v40  ;;  %v1091_v60 = vadd.f32 %v1083_v37, %v1075_v1  ;;  %v1258_v41 = vld [vmem:[#allocation2 + $0xa0] sm:$0xff]  ;;  %v1263_v55 = vld [vmem:[#allocation2 + $0xf0] sm:$0xff]  ;;  %v3093_v17 = vld [vmem:[#allocation10_spill] sm:$0xff] }
  0x87   :  { %v1103_v23 = vadd.f32 %v1086_v2, %v2359_v11  ;;  %v1104_v30 = vadd.f32 %v1087_v9, %v2361_v29  ;;  %v1092_v18 = vadd.f32 %v2753_v6, %v1076_v47  ;;  %1487 = vst [vmem:[%s3027_s5 + $0x340] sm:$0xff] %v1110_v4  ;;  %v1266_v32 = vadd.f32 %v1258_v41, %v2762_v13  ;;  %v1259_v11 = vld [vmem:[#allocation2 + $0xb0] sm:$0xff]  ;;  %v1260_v19 = vld [vmem:[#allocation2 + $0xc0] sm:$0xff] }
  0x88   :  { %v1105_v27 = vadd.f32 %v1088_v8, %v2378_v35  ;;  %v1106_v53 = vadd.f32 %v1089_v31, %v2410_v7  ;;  %v1107_v45 = vadd.f32 %v1090_v61, %v2412_v62  ;;  %v1108_v22 = vadd.f32 %v1091_v60, %v2505_v10  ;;  %v1261_v29 = vld [vmem:[#allocation2 + $0xd0] sm:$0xff]  ;;  %v3091_v3 = vld [vmem:[#allocation7_spill] sm:$0xff] }
  0x89   :  { %v1111_v42 = vmul.f32 0.07511361, %v1103_v23  ;;  %v1112_v35 = vmul.f32 0.07511361, %v1104_v30  ;;  %v1109_v48 = vadd.f32 %v2753_v6, %v1092_v18  ;;  %v1282_v5 = vadd.f32 %v1266_v32, %v2514_v52  ;;  %v1262_v56 = vld [vmem:[#allocation2 + $0xe0] sm:$0xff] }
  0x8a   :  { %v1113_v46 = vmul.f32 0.07511361, %v1105_v27  ;;  %v1114_v15 = vmul.f32 0.07511361, %v1106_v53  ;;  %v1115_v16 = vmul.f32 0.07511361, %v1107_v45  ;;  %v1267_v62 = vadd.f32 %v1259_v11, %v2775_v12 }
  0x8b   :  { %v1116_v54 = vmul.f32 0.07511361, %v1108_v22  ;;  %1488 = vst [vmem:[%s3027_s5 + $0x348] sm:$0xff] %v1111_v42  ;;  %1489 = vst [vmem:[%s3027_s5 + $0x350] sm:$0xff] %v1112_v35  ;;  %v1117_v7 = vmul.f32 0.07511361, %v1109_v48  ;;  %v1268_v13 = vadd.f32 %v1260_v19, %v2779_v28  ;;  %v1269_v24 = vadd.f32 %v1261_v29, %v2783_v34 }
  0x8c   :  { %1490 = vst [vmem:[%s3027_s5 + $0x358] sm:$0xff] %v1113_v46  ;;  %1491 = vst [vmem:[%s3027_s5 + $0x360] sm:$0xff] %v1114_v15  ;;  %v1290_v52 = vmul.f32 0.07511361, %v1282_v5  ;;  %v1254_v12 = vadd.f32 %v2801_v0, %v2721_v38  ;;  %v1255_v28 = vadd.f32 %v2803_v39, %v2723_v20  ;;  %v1256_v34 = vadd.f32 %v2725_v43, %v2848_v33  ;;  %v1281_v39 = vld [vmem:[#allocation2 + $0x81] sm:$0xff] }
  0x8d   :  { %1492 = vst [vmem:[%s3027_s5 + $0x368] sm:$0xff] %v1115_v16  ;;  %1493 = vst [vmem:[%s3027_s5 + $0x370] sm:$0xff] %v1116_v54  ;;  %v1283_v58 = vadd.f32 %v1267_v62, %v2516_v14  ;;  %v1284_v59 = vadd.f32 %v1268_v13, %v2521_v50  ;;  %v1285_v36 = vadd.f32 %v1269_v24, %v3091_v3  ;;  %v3094_v40 = vld [vmem:[#allocation11_spill] sm:$0xff] }
  0x8e   :  { %1494 = vst [vmem:[%s3027_s5 + $0x378] sm:$0xff] %v1117_v7  ;;  %v1257_v38 = vadd.f32 %v2748_v21, %v2850_v57  ;;  %1519 = vst [vmem:[%s3027_s5 + $0x3c0] sm:$0xff] %v1290_v52  ;;  %v1270_v20 = vadd.f32 %v1262_v56, %v1254_v12  ;;  %v1271_v43 = vadd.f32 %v1263_v55, %v1255_v28 }
  0x8f   :  { %v1272_v0 = vadd.f32 %v1256_v34, %v2505_v10  ;;  %v1291_v33 = vmul.f32 0.07511361, %v1283_v58  ;;  %v1292_v14 = vmul.f32 0.07511361, %v1284_v59  ;;  %v1293_v51 = vmul.f32 0.07511361, %v1285_v36 }
  0x90   :  { %v1273_v50 = vadd.f32 %v2753_v6, %v1257_v38  ;;  %v1286_v26 = vadd.f32 %v1270_v20, %v3092_v44  ;;  %v1287_v25 = vadd.f32 %v1271_v43, %v3093_v17 }
  0x91   :  { %v1288_v21 = vadd.f32 %v1272_v0, %v3094_v40  ;;  %1520 = vst [vmem:[%s3027_s5 + $0x3c8] sm:$0xff] %v1291_v33  ;;  %1521 = vst [vmem:[%s3027_s5 + $0x3d0] sm:$0xff] %v1292_v14 }
  0x92   :  { %1522 = vst [vmem:[%s3027_s5 + $0x3d8] sm:$0xff] %v1293_v51  ;;  %v1289_v10 = vadd.f32 %v1281_v39, %v1273_v50  ;;  %v1294_v6 = vmul.f32 0.07511361, %v1286_v26  ;;  %v1295_v57 = vmul.f32 0.07511361, %v1287_v25 }
  0x93   :  { %v1296_v1 = vmul.f32 0.07511361, %v1288_v21 }
  0x94   :  { %v1297_v2 = vmul.f32 0.07511361, %v1289_v10  ;;  %1523 = vst [vmem:[%s3027_s5 + $0x3e0] sm:$0xff] %v1294_v6  ;;  %1524 = vst [vmem:[%s3027_s5 + $0x3e8] sm:$0xff] %v1295_v57 }
  0x95   :  { %1525 = vst [vmem:[%s3027_s5 + $0x3f0] sm:$0xff] %v1296_v1 }
  0x96   :  { %1526 = vst [vmem:[%s3027_s5 + $0x3f8] sm:$0xff] %v1297_v2 }

</bundles_post_ra>
